<compile_context>
chip_gen: v7x
topology: tpu7x:2x2x1
jax: 0.10.0
libtpu: 0.0.40
codegen_flags: <defaults>
</compile_context>

<pallas_src>
import jax
import jax.numpy as jnp
import numpy as np
from jax.experimental import pallas as pl
from jax.experimental.pallas import tpu as pltpu

D_MODEL = 32
HEADS = 4
D_FF = 64
D_HEAD = D_MODEL // HEADS
EPS = 1e-6


def _layer_norm(x, g, b):
    # x: (M, D); g, b: (1, D)
    mu = jnp.mean(x, axis=-1, keepdims=True)
    xc = x - mu
    var = jnp.mean(xc * xc, axis=-1, keepdims=True)
    return xc * jax.lax.rsqrt(var + EPS) * g + b


def transformer_gumbel_select_kernel(
    img_ref, txt_ref,
    wqkv_ref,   # (3, H, D, dh)  [0]=Wq (pre-scaled by 1/sqrt(dh)), [1]=Wk, [2]=Wv
    bqkv_ref,   # (3, H, 1, dh)  [0]=bq (pre-scaled), [1]=bk, [2]=bv
    woh_ref,    # (H, dh, D)     Wo split per head (folded into the accumulator)
    vecs_ref,   # (6, 1, D)      [ln_g, ln_b, ffn_ln_g, ffn_ln_b, bo, b2]
    w1_ref,     # (D, D_FF)
    b1_ref,     # (1, D_FF)
    w2_ref,     # (D_FF, D)
    out_ref,    # (TB, L_txt, D)
):
    TB, Lk, D = img_ref.shape
    _, Lq, _ = txt_ref.shape

    # Fold batch into the matmul M dimension (cheap leading-dim merge).
    img2 = img_ref[...].reshape(TB * Lk, D)     # (Mk, D)
    txt2 = txt_ref[...].reshape(TB * Lq, D)     # (Mq, D)

    ln_g, ln_b = vecs_ref[0], vecs_ref[1]
    ffn_g, ffn_b = vecs_ref[2], vecs_ref[3]
    bo, b2 = vecs_ref[4], vecs_ref[5]

    # ----- shared LayerNorm on the text stream (residual branch) -----
    ln_text = _layer_norm(txt2, ln_g, ln_b)     # (Mq, D)

    # ----- multi-headed attention: key=img, value=img, query=text -----
    # TODO(synk): GumbelMultiHeadedAttention adds Gumbel noise / straight-through hard
    # sampling during training; deterministically (eval) it reduces to a plain softmax
    # over the scaled attention scores, implemented here.
    acc = jnp.zeros((TB * Lq, D), jnp.float32)
    for h in range(HEADS):                      # static unroll; no activation lane slices
        qh = jnp.dot(txt2, wqkv_ref[0, h],
                     preferred_element_type=jnp.float32) + bqkv_ref[0, h]   # (Mq, dh)
        kh = jnp.dot(img2, wqkv_ref[1, h],
                     preferred_element_type=jnp.float32) + bqkv_ref[1, h]   # (Mk, dh)
        vh = jnp.dot(img2, wqkv_ref[2, h],
                     preferred_element_type=jnp.float32) + bqkv_ref[2, h]   # (Mk, dh)

        qh3 = qh.reshape(TB, Lq, D_HEAD)
        kh3 = kh.reshape(TB, Lk, D_HEAD)
        vh3 = vh.reshape(TB, Lk, D_HEAD)

        s = jnp.einsum('bqe,bke->bqk', qh3, kh3,
                       preferred_element_type=jnp.float32)                  # (TB, Lq, Lk)
        m = jnp.max(s, axis=-1, keepdims=True)
        e = jnp.exp(s - m)
        p = e * pl.reciprocal(jnp.sum(e, axis=-1, keepdims=True), approx=True)

        ctx3 = jnp.einsum('bqk,bke->bqe', p, vh3,
                          preferred_element_type=jnp.float32)               # (TB, Lq, dh)
        ctx2 = ctx3.reshape(TB * Lq, D_HEAD)
        # Fold Wo per head into the accumulator (replaces concat + one (Mq,D)x(D,D) matmul).
        acc = acc + jnp.dot(ctx2, woh_ref[h], preferred_element_type=jnp.float32)

    attn_out = acc + bo                          # dropout(context) is identity in eval

    out = attn_out + ln_text

    # ----- PositionwiseFeedForward: LN -> Linear -> ReLU -> Linear -> +residual -----
    x = _layer_norm(out, ffn_g, ffn_b)
    inter = jnp.maximum(
        jnp.dot(x, w1_ref[...], preferred_element_type=jnp.float32) + b1_ref[...], 0.0)
    y = jnp.dot(inter, w2_ref[...], preferred_element_type=jnp.float32) + b2

    out_ref[...] = (y + out).reshape(TB, Lq, D).astype(out_ref.dtype)


# ---------------------------- wrapper-side parameter packing ----------------------------
def _pack_params(params):
    (wq, bq, wk, bk, wv, bv, wo, bo, ln_g, ln_b, fg, fb, w1, b1, w2, b2) = params
    scale = 1.0 / np.sqrt(D_HEAD).astype(np.float32)

    def w_to_heads(w):                   # (D, D) -> (H, D, dh); head h owns output cols h*dh:(h+1)*dh
        return jnp.transpose(w.reshape(D_MODEL, HEADS, D_HEAD), (1, 0, 2))

    def b_to_heads(b):                   # (1, D) -> (H, 1, dh)
        return jnp.transpose(b.reshape(1, HEADS, D_HEAD), (1, 0, 2))

    w_qkv = jnp.stack([w_to_heads(wq) * scale, w_to_heads(wk), w_to_heads(wv)], axis=0)
    b_qkv = jnp.stack([b_to_heads(bq) * scale, b_to_heads(bk), b_to_heads(bv)], axis=0)
    wo_heads = wo.reshape(HEADS, D_HEAD, D_MODEL)                 # rows h*dh:(h+1)*dh of Wo
    vecs = jnp.stack([ln_g, ln_b, fg, fb, bo, b2], axis=0)        # (6, 1, D)
    return (w_qkv, b_qkv, wo_heads, vecs, w1, b1, w2)


def _replicated_spec(p):
    # Whole-array (un-tiled) parameter block, replicated across the batch grid.
    return pl.BlockSpec(p.shape, lambda b, n=p.ndim: (0,) * n)


def _pick_block_b(batch):
    # Largest divisor of batch that still leaves >= 2 grid steps (keeps both v7x
    # TensorCores busy) while folding as much of the batch as possible per step.
    # At D=32 the VMEM footprint per step is tiny; cap would only matter at scale.
    target = max(1, batch // 2)
    for tb in range(target, 0, -1):
        if batch % tb == 0:
            return tb
    return 1


def transformer_gumbel_select_layer(inputs_image, inputs_text, params, *, block_b=None):
    B, L_img, D = inputs_image.shape
    _, L_txt, _ = inputs_text.shape
    assert D == D_MODEL

    if block_b is None:
        block_b = _pick_block_b(B)
    assert B % block_b == 0, "block_b must divide the batch"
    num_blocks = B // block_b

    packed = _pack_params(params)

    in_specs = [
        pl.BlockSpec((block_b, L_img, D), lambda b: (b, 0, 0)),   # image features
        pl.BlockSpec((block_b, L_txt, D), lambda b: (b, 0, 0)),   # text features
    ] + [_replicated_spec(p) for p in packed]

    out_spec = pl.BlockSpec((block_b, L_txt, D), lambda b: (b, 0, 0))

    return pl.pallas_call(
        transformer_gumbel_select_kernel,
        out_shape=jax.ShapeDtypeStruct((B, L_txt, D), inputs_text.dtype),
        grid=(num_blocks,),
        in_specs=in_specs,
        out_specs=out_spec,
        compiler_params=pltpu.CompilerParams(dimension_semantics=("parallel",)),
    )(inputs_image, inputs_text, *packed)


# ---------------------------- parameter init (deterministic) ----------------------------
def init_params(key):
    def linear(k, din, dout):
        kw, kb = jax.random.split(k)
        w = jax.random.normal(kw, (din, dout), jnp.float32) / jnp.sqrt(jnp.float32(din))
        b = 0.01 * jax.random.normal(kb, (1, dout), jnp.float32)
        return w, b

    ks = jax.random.split(key, 6)
    wq, bq = linear(ks[0], D_MODEL, D_MODEL)
    wk, bk = linear(ks[1], D_MODEL, D_MODEL)
    wv, bv = linear(ks[2], D_MODEL, D_MODEL)
    wo, bo = linear(ks[3], D_MODEL, D_MODEL)
    w1, b1 = linear(ks[4], D_MODEL, D_FF)
    w2, b2 = linear(ks[5], D_FF, D_MODEL)
    ln_g = jnp.ones((1, D_MODEL), jnp.float32)
    ln_b = jnp.zeros((1, D_MODEL), jnp.float32)
    ffn_ln_g = jnp.ones((1, D_MODEL), jnp.float32)
    ffn_ln_b = jnp.zeros((1, D_MODEL), jnp.float32)
    return (wq, bq, wk, bk, wv, bv, wo, bo,
            ln_g, ln_b, ffn_ln_g, ffn_ln_b,
            w1, b1, w2, b2)


# ---------------------------- pure-JAX reference for validation ----------------------------
def reference(img, txt, params):
    (wq, bq, wk, bk, wv, bv, wo, bo, ln_g, ln_b, fg, fb, w1, b1, w2, b2) = params

    def ln(x, g, b):
        mu = x.mean(-1, keepdims=True)
        var = ((x - mu) ** 2).mean(-1, keepdims=True)
        return (x - mu) / jnp.sqrt(var + EPS) * g + b

    ln_text = ln(txt, ln_g, ln_b)
    q = txt @ wq + bq
    k = img @ wk + bk
    v = img @ wv + bv
    B, Lq, D = q.shape
    Lk = k.shape[1]
    qh = q.reshape(B, Lq, HEADS, D_HEAD).transpose(0, 2, 1, 3)
    kh = k.reshape(B, Lk, HEADS, D_HEAD).transpose(0, 2, 1, 3)
    vh = v.reshape(B, Lk, HEADS, D_HEAD).transpose(0, 2, 1, 3)
    scores = jnp.einsum("bhqd,bhkd->bhqk", qh, kh) / jnp.sqrt(jnp.float32(D_HEAD))
    attn = jax.nn.softmax(scores, axis=-1)
    ctx = jnp.einsum("bhqk,bhkd->bhqd", attn, vh).transpose(0, 2, 1, 3).reshape(B, Lq, D)
    out = ctx @ wo + bo + ln_text
    x = ln(out, fg, fb)
    inter = jax.nn.relu(x @ w1 + b1)
    return inter @ w2 + b2 + out


if __name__ == "__main__":
    key = jax.random.PRNGKey(0)
    k_img, k_txt, k_par = jax.random.split(key, 3)

    B, L_IMG, L_TXT = 2, 8, 8
    inputs_image = jax.random.normal(k_img, (B, L_IMG, D_MODEL), jnp.float32)
    inputs_text = jax.random.normal(k_txt, (B, L_TXT, D_MODEL), jnp.float32)
    params = init_params(k_par)

    out = transformer_gumbel_select_layer(inputs_image, inputs_text, params)
    out = jax.block_until_ready(out)

    ref = jax.block_until_ready(reference(inputs_image, inputs_text, params))
    assert out.shape == (B, L_TXT, D_MODEL)
    assert np.all(np.isfinite(np.asarray(out)))
    np.testing.assert_allclose(np.asarray(out), np.asarray(ref), rtol=2e-2, atol=2e-2)

    print("KERNEL_OK")
</pallas_src>

<mosaic_0001>
module attributes {stable_mosaic.version = 11 : i64} {
  func.func @transformer_gumbel_select_kernel(%arg0: i32, %arg1: memref<1x8x32xf32, #tpu.memory_space<vmem>>, %arg2: memref<1x8x32xf32, #tpu.memory_space<vmem>>, %arg3: memref<3x4x32x8xf32, #tpu.memory_space<vmem>>, %arg4: memref<3x4x1x8xf32, #tpu.memory_space<vmem>>, %arg5: memref<4x8x32xf32, #tpu.memory_space<vmem>>, %arg6: memref<6x1x32xf32, #tpu.memory_space<vmem>>, %arg7: memref<32x64xf32, #tpu.memory_space<vmem>>, %arg8: memref<1x64xf32, #tpu.memory_space<vmem>>, %arg9: memref<64x32xf32, #tpu.memory_space<vmem>>, %arg10: memref<1x8x32xf32, #tpu.memory_space<vmem>>) attributes {dimension_semantics = [#tpu.dimension_semantics<parallel>], iteration_bounds = array<i64: 2>, scalar_prefetch = 0 : i64, scratch_operands = 0 : i64, tpu.core_type = #tpu.core_type<tc>, window_params = [{transform_indices = @transform_0, window_bounds = array<i64: 1, 8, 32>}, {transform_indices = @transform_1, window_bounds = array<i64: 1, 8, 32>}, {pipeline_mode = #tpu.pipeline_mode<synchronous>, transform_indices = @transform_2, window_bounds = array<i64: 3, 4, 32, 8>}, {pipeline_mode = #tpu.pipeline_mode<synchronous>, transform_indices = @transform_3, window_bounds = array<i64: 3, 4, 1, 8>}, {pipeline_mode = #tpu.pipeline_mode<synchronous>, transform_indices = @transform_4, window_bounds = array<i64: 4, 8, 32>}, {pipeline_mode = #tpu.pipeline_mode<synchronous>, transform_indices = @transform_5, window_bounds = array<i64: 6, 1, 32>}, {pipeline_mode = #tpu.pipeline_mode<synchronous>, transform_indices = @transform_6, window_bounds = array<i64: 32, 64>}, {pipeline_mode = #tpu.pipeline_mode<synchronous>, transform_indices = @transform_7, window_bounds = array<i64: 1, 64>}, {pipeline_mode = #tpu.pipeline_mode<synchronous>, transform_indices = @transform_8, window_bounds = array<i64: 64, 32>}, {transform_indices = @transform_9, window_bounds = array<i64: 1, 8, 32>}]} {
    %c0 = arith.constant 0 : index
    %c0_0 = arith.constant 0 : index
    %c0_1 = arith.constant 0 : index
    %0 = vector.load %arg1[%c0, %c0_0, %c0_1] : memref<1x8x32xf32, #tpu.memory_space<vmem>>, vector<1x8x32xf32>
    %1 = vector.shape_cast %0 : vector<1x8x32xf32> to vector<8x32xf32>
    %c0_2 = arith.constant 0 : index
    %c0_3 = arith.constant 0 : index
    %c0_4 = arith.constant 0 : index
    %2 = vector.load %arg2[%c0_2, %c0_3, %c0_4] : memref<1x8x32xf32, #tpu.memory_space<vmem>>, vector<1x8x32xf32>
    %3 = vector.shape_cast %2 : vector<1x8x32xf32> to vector<8x32xf32>
    %c0_5 = arith.constant 0 : index
    %c0_6 = arith.constant 0 : index
    %c0_7 = arith.constant 0 : index
    %4 = vector.load %arg6[%c0_5, %c0_6, %c0_7] : memref<6x1x32xf32, #tpu.memory_space<vmem>>, vector<1x1x32xf32>
    %5 = vector.shape_cast %4 : vector<1x1x32xf32> to vector<1x32xf32>
    %c1 = arith.constant 1 : index
    %c0_8 = arith.constant 0 : index
    %c0_9 = arith.constant 0 : index
    %6 = vector.load %arg6[%c1, %c0_8, %c0_9] : memref<6x1x32xf32, #tpu.memory_space<vmem>>, vector<1x1x32xf32>
    %7 = vector.shape_cast %6 : vector<1x1x32xf32> to vector<1x32xf32>
    %c2 = arith.constant 2 : index
    %c0_10 = arith.constant 0 : index
    %c0_11 = arith.constant 0 : index
    %8 = vector.load %arg6[%c2, %c0_10, %c0_11] : memref<6x1x32xf32, #tpu.memory_space<vmem>>, vector<1x1x32xf32>
    %9 = vector.shape_cast %8 : vector<1x1x32xf32> to vector<1x32xf32>
    %c3 = arith.constant 3 : index
    %c0_12 = arith.constant 0 : index
    %c0_13 = arith.constant 0 : index
    %10 = vector.load %arg6[%c3, %c0_12, %c0_13] : memref<6x1x32xf32, #tpu.memory_space<vmem>>, vector<1x1x32xf32>
    %11 = vector.shape_cast %10 : vector<1x1x32xf32> to vector<1x32xf32>
    %c4 = arith.constant 4 : index
    %c0_14 = arith.constant 0 : index
    %c0_15 = arith.constant 0 : index
    %12 = vector.load %arg6[%c4, %c0_14, %c0_15] : memref<6x1x32xf32, #tpu.memory_space<vmem>>, vector<1x1x32xf32>
    %13 = vector.shape_cast %12 : vector<1x1x32xf32> to vector<1x32xf32>
    %c5 = arith.constant 5 : index
    %c0_16 = arith.constant 0 : index
    %c0_17 = arith.constant 0 : index
    %14 = vector.load %arg6[%c5, %c0_16, %c0_17] : memref<6x1x32xf32, #tpu.memory_space<vmem>>, vector<1x1x32xf32>
    %15 = vector.shape_cast %14 : vector<1x1x32xf32> to vector<1x32xf32>
    %cst = arith.constant dense<0.000000e+00> : vector<8xf32>
    %16 = vector.multi_reduction <add>, %3, %cst [1] : vector<8x32xf32> to vector<8xf32>
    %17 = vector.shape_cast %16 : vector<8xf32> to vector<8x1xf32>
    %cst_18 = arith.constant 3.200000e+01 : f32
    %18 = vector.broadcast %cst_18 : f32 to vector<8x1xf32>
    %19 = arith.divf %17, %18 : vector<8x1xf32>
    %20 = vector.broadcast %19 : vector<8x1xf32> to vector<8x32xf32>
    %21 = arith.subf %3, %20 : vector<8x32xf32>
    %22 = arith.mulf %21, %21 : vector<8x32xf32>
    %cst_19 = arith.constant dense<0.000000e+00> : vector<8xf32>
    %23 = vector.multi_reduction <add>, %22, %cst_19 [1] : vector<8x32xf32> to vector<8xf32>
    %24 = vector.shape_cast %23 : vector<8xf32> to vector<8x1xf32>
    %cst_20 = arith.constant 3.200000e+01 : f32
    %25 = vector.broadcast %cst_20 : f32 to vector<8x1xf32>
    %26 = arith.divf %24, %25 : vector<8x1xf32>
    %cst_21 = arith.constant 9.99999997E-7 : f32
    %27 = vector.broadcast %cst_21 : f32 to vector<8x1xf32>
    %28 = arith.addf %26, %27 : vector<8x1xf32>
    %29 = math.rsqrt %28 : vector<8x1xf32>
    %30 = vector.broadcast %29 : vector<8x1xf32> to vector<8x32xf32>
    %31 = arith.mulf %21, %30 : vector<8x32xf32>
    %32 = vector.broadcast %5 : vector<1x32xf32> to vector<8x32xf32>
    %33 = arith.mulf %31, %32 : vector<8x32xf32>
    %34 = vector.broadcast %7 : vector<1x32xf32> to vector<8x32xf32>
    %35 = arith.addf %33, %34 : vector<8x32xf32>
    %cst_22 = arith.constant 0.000000e+00 : f32
    %36 = vector.broadcast %cst_22 : f32 to vector<8x32xf32>
    %c0_23 = arith.constant 0 : index
    %c0_24 = arith.constant 0 : index
    %c0_25 = arith.constant 0 : index
    %c0_26 = arith.constant 0 : index
    %37 = vector.load %arg3[%c0_23, %c0_24, %c0_25, %c0_26] : memref<3x4x32x8xf32, #tpu.memory_space<vmem>>, vector<1x1x32x8xf32>
    %38 = vector.shape_cast %37 : vector<1x1x32x8xf32> to vector<32x8xf32>
    %cst_27 = arith.constant dense<0.000000e+00> : vector<8x8xf32>
    %39 = tpu.matmul %3, %38, %cst_27 {dimension_numbers = #tpu.dot_dimension_numbers<[1], [0], [0], [1], [0, 0, 1, 1], [], []>} : vector<8x32xf32>, vector<32x8xf32>, vector<8x8xf32> -> vector<8x8xf32>
    %c0_28 = arith.constant 0 : index
    %c0_29 = arith.constant 0 : index
    %c0_30 = arith.constant 0 : index
    %c0_31 = arith.constant 0 : index
    %40 = vector.load %arg4[%c0_28, %c0_29, %c0_30, %c0_31] : memref<3x4x1x8xf32, #tpu.memory_space<vmem>>, vector<1x1x1x8xf32>
    %41 = vector.shape_cast %40 : vector<1x1x1x8xf32> to vector<1x8xf32>
    %42 = vector.broadcast %41 : vector<1x8xf32> to vector<8x8xf32>
    %43 = arith.addf %39, %42 : vector<8x8xf32>
    %c1_32 = arith.constant 1 : index
    %c0_33 = arith.constant 0 : index
    %c0_34 = arith.constant 0 : index
    %c0_35 = arith.constant 0 : index
    %44 = vector.load %arg3[%c1_32, %c0_33, %c0_34, %c0_35] : memref<3x4x32x8xf32, #tpu.memory_space<vmem>>, vector<1x1x32x8xf32>
    %45 = vector.shape_cast %44 : vector<1x1x32x8xf32> to vector<32x8xf32>
    %cst_36 = arith.constant dense<0.000000e+00> : vector<8x8xf32>
    %46 = tpu.matmul %1, %45, %cst_36 {dimension_numbers = #tpu.dot_dimension_numbers<[1], [0], [0], [1], [0, 0, 1, 1], [], []>} : vector<8x32xf32>, vector<32x8xf32>, vector<8x8xf32> -> vector<8x8xf32>
    %c1_37 = arith.constant 1 : index
    %c0_38 = arith.constant 0 : index
    %c0_39 = arith.constant 0 : index
    %c0_40 = arith.constant 0 : index
    %47 = vector.load %arg4[%c1_37, %c0_38, %c0_39, %c0_40] : memref<3x4x1x8xf32, #tpu.memory_space<vmem>>, vector<1x1x1x8xf32>
    %48 = vector.shape_cast %47 : vector<1x1x1x8xf32> to vector<1x8xf32>
    %49 = vector.broadcast %48 : vector<1x8xf32> to vector<8x8xf32>
    %50 = arith.addf %46, %49 : vector<8x8xf32>
    %c2_41 = arith.constant 2 : index
    %c0_42 = arith.constant 0 : index
    %c0_43 = arith.constant 0 : index
    %c0_44 = arith.constant 0 : index
    %51 = vector.load %arg3[%c2_41, %c0_42, %c0_43, %c0_44] : memref<3x4x32x8xf32, #tpu.memory_space<vmem>>, vector<1x1x32x8xf32>
    %52 = vector.shape_cast %51 : vector<1x1x32x8xf32> to vector<32x8xf32>
    %cst_45 = arith.constant dense<0.000000e+00> : vector<8x8xf32>
    %53 = tpu.matmul %1, %52, %cst_45 {dimension_numbers = #tpu.dot_dimension_numbers<[1], [0], [0], [1], [0, 0, 1, 1], [], []>} : vector<8x32xf32>, vector<32x8xf32>, vector<8x8xf32> -> vector<8x8xf32>
    %c2_46 = arith.constant 2 : index
    %c0_47 = arith.constant 0 : index
    %c0_48 = arith.constant 0 : index
    %c0_49 = arith.constant 0 : index
    %54 = vector.load %arg4[%c2_46, %c0_47, %c0_48, %c0_49] : memref<3x4x1x8xf32, #tpu.memory_space<vmem>>, vector<1x1x1x8xf32>
    %55 = vector.shape_cast %54 : vector<1x1x1x8xf32> to vector<1x8xf32>
    %56 = vector.broadcast %55 : vector<1x8xf32> to vector<8x8xf32>
    %57 = arith.addf %53, %56 : vector<8x8xf32>
    %58 = vector.shape_cast %43 : vector<8x8xf32> to vector<1x8x8xf32>
    %59 = vector.shape_cast %50 : vector<8x8xf32> to vector<1x8x8xf32>
    %60 = vector.shape_cast %57 : vector<8x8xf32> to vector<1x8x8xf32>
    "tpu.trace_start"() <{level = 10 : i32, message = "bqe,bke->bqk"}> : () -> ()
    %cst_50 = arith.constant dense<0.000000e+00> : vector<1x8x8xf32>
    %61 = tpu.matmul %58, %59, %cst_50 {dimension_numbers = #tpu.dot_dimension_numbers<[2], [2], [1], [1], [0, 0, 0, 1, 1, 1], [0], [0]>} : vector<1x8x8xf32>, vector<1x8x8xf32>, vector<1x8x8xf32> -> vector<1x8x8xf32>
    "tpu.trace_stop"() : () -> ()
    %cst_51 = arith.constant dense<0xFF800000> : vector<1x8xf32>
    %62 = vector.multi_reduction <maximumf>, %61, %cst_51 [2] : vector<1x8x8xf32> to vector<1x8xf32>
    %63 = vector.shape_cast %62 : vector<1x8xf32> to vector<1x8x1xf32>
    %64 = vector.broadcast %63 : vector<1x8x1xf32> to vector<1x8x8xf32>
    %65 = arith.subf %61, %64 : vector<1x8x8xf32>
    %66 = math.exp %65 : vector<1x8x8xf32>
    %cst_52 = arith.constant dense<0.000000e+00> : vector<1x8xf32>
    %67 = vector.multi_reduction <add>, %66, %cst_52 [2] : vector<1x8x8xf32> to vector<1x8xf32>
    %68 = vector.shape_cast %67 : vector<1x8xf32> to vector<1x8x1xf32>
    %69 = tpu.reciprocal %68 {approx = true} : vector<1x8x1xf32> -> vector<1x8x1xf32>
    %70 = vector.broadcast %69 : vector<1x8x1xf32> to vector<1x8x8xf32>
    %71 = arith.mulf %66, %70 : vector<1x8x8xf32>
    "tpu.trace_start"() <{level = 10 : i32, message = "bqk,bke->bqe"}> : () -> ()
    %cst_53 = arith.constant dense<0.000000e+00> : vector<1x8x8xf32>
    %72 = tpu.matmul %71, %60, %cst_53 {dimension_numbers = #tpu.dot_dimension_numbers<[2], [1], [1], [2], [0, 0, 0, 1, 1, 2], [0], [0]>} : vector<1x8x8xf32>, vector<1x8x8xf32>, vector<1x8x8xf32> -> vector<1x8x8xf32>
    "tpu.trace_stop"() : () -> ()
    %73 = vector.shape_cast %72 : vector<1x8x8xf32> to vector<8x8xf32>
    %c0_54 = arith.constant 0 : index
    %c0_55 = arith.constant 0 : index
    %c0_56 = arith.constant 0 : index
    %74 = vector.load %arg5[%c0_54, %c0_55, %c0_56] : memref<4x8x32xf32, #tpu.memory_space<vmem>>, vector<1x8x32xf32>
    %75 = vector.shape_cast %74 : vector<1x8x32xf32> to vector<8x32xf32>
    %cst_57 = arith.constant dense<0.000000e+00> : vector<8x32xf32>
    %76 = tpu.matmul %73, %75, %cst_57 {dimension_numbers = #tpu.dot_dimension_numbers<[1], [0], [0], [1], [0, 0, 1, 1], [], []>} : vector<8x8xf32>, vector<8x32xf32>, vector<8x32xf32> -> vector<8x32xf32>
    %77 = arith.addf %36, %76 : vector<8x32xf32>
    %c0_58 = arith.constant 0 : index
    %c1_59 = arith.constant 1 : index
    %c0_60 = arith.constant 0 : index
    %c0_61 = arith.constant 0 : index
    %78 = vector.load %arg3[%c0_58, %c1_59, %c0_60, %c0_61] : memref<3x4x32x8xf32, #tpu.memory_space<vmem>>, vector<1x1x32x8xf32>
    %79 = vector.shape_cast %78 : vector<1x1x32x8xf32> to vector<32x8xf32>
    %cst_62 = arith.constant dense<0.000000e+00> : vector<8x8xf32>
    %80 = tpu.matmul %3, %79, %cst_62 {dimension_numbers = #tpu.dot_dimension_numbers<[1], [0], [0], [1], [0, 0, 1, 1], [], []>} : vector<8x32xf32>, vector<32x8xf32>, vector<8x8xf32> -> vector<8x8xf32>
    %c0_63 = arith.constant 0 : index
    %c1_64 = arith.constant 1 : index
    %c0_65 = arith.constant 0 : index
    %c0_66 = arith.constant 0 : index
    %81 = vector.load %arg4[%c0_63, %c1_64, %c0_65, %c0_66] : memref<3x4x1x8xf32, #tpu.memory_space<vmem>>, vector<1x1x1x8xf32>
    %82 = vector.shape_cast %81 : vector<1x1x1x8xf32> to vector<1x8xf32>
    %83 = vector.broadcast %82 : vector<1x8xf32> to vector<8x8xf32>
    %84 = arith.addf %80, %83 : vector<8x8xf32>
    %c1_67 = arith.constant 1 : index
    %c1_68 = arith.constant 1 : index
    %c0_69 = arith.constant 0 : index
    %c0_70 = arith.constant 0 : index
    %85 = vector.load %arg3[%c1_67, %c1_68, %c0_69, %c0_70] : memref<3x4x32x8xf32, #tpu.memory_space<vmem>>, vector<1x1x32x8xf32>
    %86 = vector.shape_cast %85 : vector<1x1x32x8xf32> to vector<32x8xf32>
    %cst_71 = arith.constant dense<0.000000e+00> : vector<8x8xf32>
    %87 = tpu.matmul %1, %86, %cst_71 {dimension_numbers = #tpu.dot_dimension_numbers<[1], [0], [0], [1], [0, 0, 1, 1], [], []>} : vector<8x32xf32>, vector<32x8xf32>, vector<8x8xf32> -> vector<8x8xf32>
    %c1_72 = arith.constant 1 : index
    %c1_73 = arith.constant 1 : index
    %c0_74 = arith.constant 0 : index
    %c0_75 = arith.constant 0 : index
    %88 = vector.load %arg4[%c1_72, %c1_73, %c0_74, %c0_75] : memref<3x4x1x8xf32, #tpu.memory_space<vmem>>, vector<1x1x1x8xf32>
    %89 = vector.shape_cast %88 : vector<1x1x1x8xf32> to vector<1x8xf32>
    %90 = vector.broadcast %89 : vector<1x8xf32> to vector<8x8xf32>
    %91 = arith.addf %87, %90 : vector<8x8xf32>
    %c2_76 = arith.constant 2 : index
    %c1_77 = arith.constant 1 : index
    %c0_78 = arith.constant 0 : index
    %c0_79 = arith.constant 0 : index
    %92 = vector.load %arg3[%c2_76, %c1_77, %c0_78, %c0_79] : memref<3x4x32x8xf32, #tpu.memory_space<vmem>>, vector<1x1x32x8xf32>
    %93 = vector.shape_cast %92 : vector<1x1x32x8xf32> to vector<32x8xf32>
    %cst_80 = arith.constant dense<0.000000e+00> : vector<8x8xf32>
    %94 = tpu.matmul %1, %93, %cst_80 {dimension_numbers = #tpu.dot_dimension_numbers<[1], [0], [0], [1], [0, 0, 1, 1], [], []>} : vector<8x32xf32>, vector<32x8xf32>, vector<8x8xf32> -> vector<8x8xf32>
    %c2_81 = arith.constant 2 : index
    %c1_82 = arith.constant 1 : index
    %c0_83 = arith.constant 0 : index
    %c0_84 = arith.constant 0 : index
    %95 = vector.load %arg4[%c2_81, %c1_82, %c0_83, %c0_84] : memref<3x4x1x8xf32, #tpu.memory_space<vmem>>, vector<1x1x1x8xf32>
    %96 = vector.shape_cast %95 : vector<1x1x1x8xf32> to vector<1x8xf32>
    %97 = vector.broadcast %96 : vector<1x8xf32> to vector<8x8xf32>
    %98 = arith.addf %94, %97 : vector<8x8xf32>
    %99 = vector.shape_cast %84 : vector<8x8xf32> to vector<1x8x8xf32>
    %100 = vector.shape_cast %91 : vector<8x8xf32> to vector<1x8x8xf32>
    %101 = vector.shape_cast %98 : vector<8x8xf32> to vector<1x8x8xf32>
    "tpu.trace_start"() <{level = 10 : i32, message = "bqe,bke->bqk"}> : () -> ()
    %cst_85 = arith.constant dense<0.000000e+00> : vector<1x8x8xf32>
    %102 = tpu.matmul %99, %100, %cst_85 {dimension_numbers = #tpu.dot_dimension_numbers<[2], [2], [1], [1], [0, 0, 0, 1, 1, 1], [0], [0]>} : vector<1x8x8xf32>, vector<1x8x8xf32>, vector<1x8x8xf32> -> vector<1x8x8xf32>
    "tpu.trace_stop"() : () -> ()
    %cst_86 = arith.constant dense<0xFF800000> : vector<1x8xf32>
    %103 = vector.multi_reduction <maximumf>, %102, %cst_86 [2] : vector<1x8x8xf32> to vector<1x8xf32>
    %104 = vector.shape_cast %103 : vector<1x8xf32> to vector<1x8x1xf32>
    %105 = vector.broadcast %104 : vector<1x8x1xf32> to vector<1x8x8xf32>
    %106 = arith.subf %102, %105 : vector<1x8x8xf32>
    %107 = math.exp %106 : vector<1x8x8xf32>
    %cst_87 = arith.constant dense<0.000000e+00> : vector<1x8xf32>
    %108 = vector.multi_reduction <add>, %107, %cst_87 [2] : vector<1x8x8xf32> to vector<1x8xf32>
    %109 = vector.shape_cast %108 : vector<1x8xf32> to vector<1x8x1xf32>
    %110 = tpu.reciprocal %109 {approx = true} : vector<1x8x1xf32> -> vector<1x8x1xf32>
    %111 = vector.broadcast %110 : vector<1x8x1xf32> to vector<1x8x8xf32>
    %112 = arith.mulf %107, %111 : vector<1x8x8xf32>
    "tpu.trace_start"() <{level = 10 : i32, message = "bqk,bke->bqe"}> : () -> ()
    %cst_88 = arith.constant dense<0.000000e+00> : vector<1x8x8xf32>
    %113 = tpu.matmul %112, %101, %cst_88 {dimension_numbers = #tpu.dot_dimension_numbers<[2], [1], [1], [2], [0, 0, 0, 1, 1, 2], [0], [0]>} : vector<1x8x8xf32>, vector<1x8x8xf32>, vector<1x8x8xf32> -> vector<1x8x8xf32>
    "tpu.trace_stop"() : () -> ()
    %114 = vector.shape_cast %113 : vector<1x8x8xf32> to vector<8x8xf32>
    %c1_89 = arith.constant 1 : index
    %c0_90 = arith.constant 0 : index
    %c0_91 = arith.constant 0 : index
    %115 = vector.load %arg5[%c1_89, %c0_90, %c0_91] : memref<4x8x32xf32, #tpu.memory_space<vmem>>, vector<1x8x32xf32>
    %116 = vector.shape_cast %115 : vector<1x8x32xf32> to vector<8x32xf32>
    %cst_92 = arith.constant dense<0.000000e+00> : vector<8x32xf32>
    %117 = tpu.matmul %114, %116, %cst_92 {dimension_numbers = #tpu.dot_dimension_numbers<[1], [0], [0], [1], [0, 0, 1, 1], [], []>} : vector<8x8xf32>, vector<8x32xf32>, vector<8x32xf32> -> vector<8x32xf32>
    %118 = arith.addf %77, %117 : vector<8x32xf32>
    %c0_93 = arith.constant 0 : index
    %c2_94 = arith.constant 2 : index
    %c0_95 = arith.constant 0 : index
    %c0_96 = arith.constant 0 : index
    %119 = vector.load %arg3[%c0_93, %c2_94, %c0_95, %c0_96] : memref<3x4x32x8xf32, #tpu.memory_space<vmem>>, vector<1x1x32x8xf32>
    %120 = vector.shape_cast %119 : vector<1x1x32x8xf32> to vector<32x8xf32>
    %cst_97 = arith.constant dense<0.000000e+00> : vector<8x8xf32>
    %121 = tpu.matmul %3, %120, %cst_97 {dimension_numbers = #tpu.dot_dimension_numbers<[1], [0], [0], [1], [0, 0, 1, 1], [], []>} : vector<8x32xf32>, vector<32x8xf32>, vector<8x8xf32> -> vector<8x8xf32>
    %c0_98 = arith.constant 0 : index
    %c2_99 = arith.constant 2 : index
    %c0_100 = arith.constant 0 : index
    %c0_101 = arith.constant 0 : index
    %122 = vector.load %arg4[%c0_98, %c2_99, %c0_100, %c0_101] : memref<3x4x1x8xf32, #tpu.memory_space<vmem>>, vector<1x1x1x8xf32>
    %123 = vector.shape_cast %122 : vector<1x1x1x8xf32> to vector<1x8xf32>
    %124 = vector.broadcast %123 : vector<1x8xf32> to vector<8x8xf32>
    %125 = arith.addf %121, %124 : vector<8x8xf32>
    %c1_102 = arith.constant 1 : index
    %c2_103 = arith.constant 2 : index
    %c0_104 = arith.constant 0 : index
    %c0_105 = arith.constant 0 : index
    %126 = vector.load %arg3[%c1_102, %c2_103, %c0_104, %c0_105] : memref<3x4x32x8xf32, #tpu.memory_space<vmem>>, vector<1x1x32x8xf32>
    %127 = vector.shape_cast %126 : vector<1x1x32x8xf32> to vector<32x8xf32>
    %cst_106 = arith.constant dense<0.000000e+00> : vector<8x8xf32>
    %128 = tpu.matmul %1, %127, %cst_106 {dimension_numbers = #tpu.dot_dimension_numbers<[1], [0], [0], [1], [0, 0, 1, 1], [], []>} : vector<8x32xf32>, vector<32x8xf32>, vector<8x8xf32> -> vector<8x8xf32>
    %c1_107 = arith.constant 1 : index
    %c2_108 = arith.constant 2 : index
    %c0_109 = arith.constant 0 : index
    %c0_110 = arith.constant 0 : index
    %129 = vector.load %arg4[%c1_107, %c2_108, %c0_109, %c0_110] : memref<3x4x1x8xf32, #tpu.memory_space<vmem>>, vector<1x1x1x8xf32>
    %130 = vector.shape_cast %129 : vector<1x1x1x8xf32> to vector<1x8xf32>
    %131 = vector.broadcast %130 : vector<1x8xf32> to vector<8x8xf32>
    %132 = arith.addf %128, %131 : vector<8x8xf32>
    %c2_111 = arith.constant 2 : index
    %c2_112 = arith.constant 2 : index
    %c0_113 = arith.constant 0 : index
    %c0_114 = arith.constant 0 : index
    %133 = vector.load %arg3[%c2_111, %c2_112, %c0_113, %c0_114] : memref<3x4x32x8xf32, #tpu.memory_space<vmem>>, vector<1x1x32x8xf32>
    %134 = vector.shape_cast %133 : vector<1x1x32x8xf32> to vector<32x8xf32>
    %cst_115 = arith.constant dense<0.000000e+00> : vector<8x8xf32>
    %135 = tpu.matmul %1, %134, %cst_115 {dimension_numbers = #tpu.dot_dimension_numbers<[1], [0], [0], [1], [0, 0, 1, 1], [], []>} : vector<8x32xf32>, vector<32x8xf32>, vector<8x8xf32> -> vector<8x8xf32>
    %c2_116 = arith.constant 2 : index
    %c2_117 = arith.constant 2 : index
    %c0_118 = arith.constant 0 : index
    %c0_119 = arith.constant 0 : index
    %136 = vector.load %arg4[%c2_116, %c2_117, %c0_118, %c0_119] : memref<3x4x1x8xf32, #tpu.memory_space<vmem>>, vector<1x1x1x8xf32>
    %137 = vector.shape_cast %136 : vector<1x1x1x8xf32> to vector<1x8xf32>
    %138 = vector.broadcast %137 : vector<1x8xf32> to vector<8x8xf32>
    %139 = arith.addf %135, %138 : vector<8x8xf32>
    %140 = vector.shape_cast %125 : vector<8x8xf32> to vector<1x8x8xf32>
    %141 = vector.shape_cast %132 : vector<8x8xf32> to vector<1x8x8xf32>
    %142 = vector.shape_cast %139 : vector<8x8xf32> to vector<1x8x8xf32>
    "tpu.trace_start"() <{level = 10 : i32, message = "bqe,bke->bqk"}> : () -> ()
    %cst_120 = arith.constant dense<0.000000e+00> : vector<1x8x8xf32>
    %143 = tpu.matmul %140, %141, %cst_120 {dimension_numbers = #tpu.dot_dimension_numbers<[2], [2], [1], [1], [0, 0, 0, 1, 1, 1], [0], [0]>} : vector<1x8x8xf32>, vector<1x8x8xf32>, vector<1x8x8xf32> -> vector<1x8x8xf32>
    "tpu.trace_stop"() : () -> ()
    %cst_121 = arith.constant dense<0xFF800000> : vector<1x8xf32>
    %144 = vector.multi_reduction <maximumf>, %143, %cst_121 [2] : vector<1x8x8xf32> to vector<1x8xf32>
    %145 = vector.shape_cast %144 : vector<1x8xf32> to vector<1x8x1xf32>
    %146 = vector.broadcast %145 : vector<1x8x1xf32> to vector<1x8x8xf32>
    %147 = arith.subf %143, %146 : vector<1x8x8xf32>
    %148 = math.exp %147 : vector<1x8x8xf32>
    %cst_122 = arith.constant dense<0.000000e+00> : vector<1x8xf32>
    %149 = vector.multi_reduction <add>, %148, %cst_122 [2] : vector<1x8x8xf32> to vector<1x8xf32>
    %150 = vector.shape_cast %149 : vector<1x8xf32> to vector<1x8x1xf32>
    %151 = tpu.reciprocal %150 {approx = true} : vector<1x8x1xf32> -> vector<1x8x1xf32>
    %152 = vector.broadcast %151 : vector<1x8x1xf32> to vector<1x8x8xf32>
    %153 = arith.mulf %148, %152 : vector<1x8x8xf32>
    "tpu.trace_start"() <{level = 10 : i32, message = "bqk,bke->bqe"}> : () -> ()
    %cst_123 = arith.constant dense<0.000000e+00> : vector<1x8x8xf32>
    %154 = tpu.matmul %153, %142, %cst_123 {dimension_numbers = #tpu.dot_dimension_numbers<[2], [1], [1], [2], [0, 0, 0, 1, 1, 2], [0], [0]>} : vector<1x8x8xf32>, vector<1x8x8xf32>, vector<1x8x8xf32> -> vector<1x8x8xf32>
    "tpu.trace_stop"() : () -> ()
    %155 = vector.shape_cast %154 : vector<1x8x8xf32> to vector<8x8xf32>
    %c2_124 = arith.constant 2 : index
    %c0_125 = arith.constant 0 : index
    %c0_126 = arith.constant 0 : index
    %156 = vector.load %arg5[%c2_124, %c0_125, %c0_126] : memref<4x8x32xf32, #tpu.memory_space<vmem>>, vector<1x8x32xf32>
    %157 = vector.shape_cast %156 : vector<1x8x32xf32> to vector<8x32xf32>
    %cst_127 = arith.constant dense<0.000000e+00> : vector<8x32xf32>
    %158 = tpu.matmul %155, %157, %cst_127 {dimension_numbers = #tpu.dot_dimension_numbers<[1], [0], [0], [1], [0, 0, 1, 1], [], []>} : vector<8x8xf32>, vector<8x32xf32>, vector<8x32xf32> -> vector<8x32xf32>
    %159 = arith.addf %118, %158 : vector<8x32xf32>
    %c0_128 = arith.constant 0 : index
    %c3_129 = arith.constant 3 : index
    %c0_130 = arith.constant 0 : index
    %c0_131 = arith.constant 0 : index
    %160 = vector.load %arg3[%c0_128, %c3_129, %c0_130, %c0_131] : memref<3x4x32x8xf32, #tpu.memory_space<vmem>>, vector<1x1x32x8xf32>
    %161 = vector.shape_cast %160 : vector<1x1x32x8xf32> to vector<32x8xf32>
    %cst_132 = arith.constant dense<0.000000e+00> : vector<8x8xf32>
    %162 = tpu.matmul %3, %161, %cst_132 {dimension_numbers = #tpu.dot_dimension_numbers<[1], [0], [0], [1], [0, 0, 1, 1], [], []>} : vector<8x32xf32>, vector<32x8xf32>, vector<8x8xf32> -> vector<8x8xf32>
    %c0_133 = arith.constant 0 : index
    %c3_134 = arith.constant 3 : index
    %c0_135 = arith.constant 0 : index
    %c0_136 = arith.constant 0 : index
    %163 = vector.load %arg4[%c0_133, %c3_134, %c0_135, %c0_136] : memref<3x4x1x8xf32, #tpu.memory_space<vmem>>, vector<1x1x1x8xf32>
    %164 = vector.shape_cast %163 : vector<1x1x1x8xf32> to vector<1x8xf32>
    %165 = vector.broadcast %164 : vector<1x8xf32> to vector<8x8xf32>
    %166 = arith.addf %162, %165 : vector<8x8xf32>
    %c1_137 = arith.constant 1 : index
    %c3_138 = arith.constant 3 : index
    %c0_139 = arith.constant 0 : index
    %c0_140 = arith.constant 0 : index
    %167 = vector.load %arg3[%c1_137, %c3_138, %c0_139, %c0_140] : memref<3x4x32x8xf32, #tpu.memory_space<vmem>>, vector<1x1x32x8xf32>
    %168 = vector.shape_cast %167 : vector<1x1x32x8xf32> to vector<32x8xf32>
    %cst_141 = arith.constant dense<0.000000e+00> : vector<8x8xf32>
    %169 = tpu.matmul %1, %168, %cst_141 {dimension_numbers = #tpu.dot_dimension_numbers<[1], [0], [0], [1], [0, 0, 1, 1], [], []>} : vector<8x32xf32>, vector<32x8xf32>, vector<8x8xf32> -> vector<8x8xf32>
    %c1_142 = arith.constant 1 : index
    %c3_143 = arith.constant 3 : index
    %c0_144 = arith.constant 0 : index
    %c0_145 = arith.constant 0 : index
    %170 = vector.load %arg4[%c1_142, %c3_143, %c0_144, %c0_145] : memref<3x4x1x8xf32, #tpu.memory_space<vmem>>, vector<1x1x1x8xf32>
    %171 = vector.shape_cast %170 : vector<1x1x1x8xf32> to vector<1x8xf32>
    %172 = vector.broadcast %171 : vector<1x8xf32> to vector<8x8xf32>
    %173 = arith.addf %169, %172 : vector<8x8xf32>
    %c2_146 = arith.constant 2 : index
    %c3_147 = arith.constant 3 : index
    %c0_148 = arith.constant 0 : index
    %c0_149 = arith.constant 0 : index
    %174 = vector.load %arg3[%c2_146, %c3_147, %c0_148, %c0_149] : memref<3x4x32x8xf32, #tpu.memory_space<vmem>>, vector<1x1x32x8xf32>
    %175 = vector.shape_cast %174 : vector<1x1x32x8xf32> to vector<32x8xf32>
    %cst_150 = arith.constant dense<0.000000e+00> : vector<8x8xf32>
    %176 = tpu.matmul %1, %175, %cst_150 {dimension_numbers = #tpu.dot_dimension_numbers<[1], [0], [0], [1], [0, 0, 1, 1], [], []>} : vector<8x32xf32>, vector<32x8xf32>, vector<8x8xf32> -> vector<8x8xf32>
    %c2_151 = arith.constant 2 : index
    %c3_152 = arith.constant 3 : index
    %c0_153 = arith.constant 0 : index
    %c0_154 = arith.constant 0 : index
    %177 = vector.load %arg4[%c2_151, %c3_152, %c0_153, %c0_154] : memref<3x4x1x8xf32, #tpu.memory_space<vmem>>, vector<1x1x1x8xf32>
    %178 = vector.shape_cast %177 : vector<1x1x1x8xf32> to vector<1x8xf32>
    %179 = vector.broadcast %178 : vector<1x8xf32> to vector<8x8xf32>
    %180 = arith.addf %176, %179 : vector<8x8xf32>
    %181 = vector.shape_cast %166 : vector<8x8xf32> to vector<1x8x8xf32>
    %182 = vector.shape_cast %173 : vector<8x8xf32> to vector<1x8x8xf32>
    %183 = vector.shape_cast %180 : vector<8x8xf32> to vector<1x8x8xf32>
    "tpu.trace_start"() <{level = 10 : i32, message = "bqe,bke->bqk"}> : () -> ()
    %cst_155 = arith.constant dense<0.000000e+00> : vector<1x8x8xf32>
    %184 = tpu.matmul %181, %182, %cst_155 {dimension_numbers = #tpu.dot_dimension_numbers<[2], [2], [1], [1], [0, 0, 0, 1, 1, 1], [0], [0]>} : vector<1x8x8xf32>, vector<1x8x8xf32>, vector<1x8x8xf32> -> vector<1x8x8xf32>
    "tpu.trace_stop"() : () -> ()
    %cst_156 = arith.constant dense<0xFF800000> : vector<1x8xf32>
    %185 = vector.multi_reduction <maximumf>, %184, %cst_156 [2] : vector<1x8x8xf32> to vector<1x8xf32>
    %186 = vector.shape_cast %185 : vector<1x8xf32> to vector<1x8x1xf32>
    %187 = vector.broadcast %186 : vector<1x8x1xf32> to vector<1x8x8xf32>
    %188 = arith.subf %184, %187 : vector<1x8x8xf32>
    %189 = math.exp %188 : vector<1x8x8xf32>
    %cst_157 = arith.constant dense<0.000000e+00> : vector<1x8xf32>
    %190 = vector.multi_reduction <add>, %189, %cst_157 [2] : vector<1x8x8xf32> to vector<1x8xf32>
    %191 = vector.shape_cast %190 : vector<1x8xf32> to vector<1x8x1xf32>
    %192 = tpu.reciprocal %191 {approx = true} : vector<1x8x1xf32> -> vector<1x8x1xf32>
    %193 = vector.broadcast %192 : vector<1x8x1xf32> to vector<1x8x8xf32>
    %194 = arith.mulf %189, %193 : vector<1x8x8xf32>
    "tpu.trace_start"() <{level = 10 : i32, message = "bqk,bke->bqe"}> : () -> ()
    %cst_158 = arith.constant dense<0.000000e+00> : vector<1x8x8xf32>
    %195 = tpu.matmul %194, %183, %cst_158 {dimension_numbers = #tpu.dot_dimension_numbers<[2], [1], [1], [2], [0, 0, 0, 1, 1, 2], [0], [0]>} : vector<1x8x8xf32>, vector<1x8x8xf32>, vector<1x8x8xf32> -> vector<1x8x8xf32>
    "tpu.trace_stop"() : () -> ()
    %196 = vector.shape_cast %195 : vector<1x8x8xf32> to vector<8x8xf32>
    %c3_159 = arith.constant 3 : index
    %c0_160 = arith.constant 0 : index
    %c0_161 = arith.constant 0 : index
    %197 = vector.load %arg5[%c3_159, %c0_160, %c0_161] : memref<4x8x32xf32, #tpu.memory_space<vmem>>, vector<1x8x32xf32>
    %198 = vector.shape_cast %197 : vector<1x8x32xf32> to vector<8x32xf32>
    %cst_162 = arith.constant dense<0.000000e+00> : vector<8x32xf32>
    %199 = tpu.matmul %196, %198, %cst_162 {dimension_numbers = #tpu.dot_dimension_numbers<[1], [0], [0], [1], [0, 0, 1, 1], [], []>} : vector<8x8xf32>, vector<8x32xf32>, vector<8x32xf32> -> vector<8x32xf32>
    %200 = arith.addf %159, %199 : vector<8x32xf32>
    %201 = vector.broadcast %13 : vector<1x32xf32> to vector<8x32xf32>
    %202 = arith.addf %200, %201 : vector<8x32xf32>
    %203 = arith.addf %202, %35 : vector<8x32xf32>
    %cst_163 = arith.constant dense<0.000000e+00> : vector<8xf32>
    %204 = vector.multi_reduction <add>, %203, %cst_163 [1] : vector<8x32xf32> to vector<8xf32>
    %205 = vector.shape_cast %204 : vector<8xf32> to vector<8x1xf32>
    %cst_164 = arith.constant 3.200000e+01 : f32
    %206 = vector.broadcast %cst_164 : f32 to vector<8x1xf32>
    %207 = arith.divf %205, %206 : vector<8x1xf32>
    %208 = vector.broadcast %207 : vector<8x1xf32> to vector<8x32xf32>
    %209 = arith.subf %203, %208 : vector<8x32xf32>
    %210 = arith.mulf %209, %209 : vector<8x32xf32>
    %cst_165 = arith.constant dense<0.000000e+00> : vector<8xf32>
    %211 = vector.multi_reduction <add>, %210, %cst_165 [1] : vector<8x32xf32> to vector<8xf32>
    %212 = vector.shape_cast %211 : vector<8xf32> to vector<8x1xf32>
    %cst_166 = arith.constant 3.200000e+01 : f32
    %213 = vector.broadcast %cst_166 : f32 to vector<8x1xf32>
    %214 = arith.divf %212, %213 : vector<8x1xf32>
    %cst_167 = arith.constant 9.99999997E-7 : f32
    %215 = vector.broadcast %cst_167 : f32 to vector<8x1xf32>
    %216 = arith.addf %214, %215 : vector<8x1xf32>
    %217 = math.rsqrt %216 : vector<8x1xf32>
    %218 = vector.broadcast %217 : vector<8x1xf32> to vector<8x32xf32>
    %219 = arith.mulf %209, %218 : vector<8x32xf32>
    %220 = vector.broadcast %9 : vector<1x32xf32> to vector<8x32xf32>
    %221 = arith.mulf %219, %220 : vector<8x32xf32>
    %222 = vector.broadcast %11 : vector<1x32xf32> to vector<8x32xf32>
    %223 = arith.addf %221, %222 : vector<8x32xf32>
    %c0_168 = arith.constant 0 : index
    %c0_169 = arith.constant 0 : index
    %224 = vector.load %arg7[%c0_168, %c0_169] : memref<32x64xf32, #tpu.memory_space<vmem>>, vector<32x64xf32>
    %cst_170 = arith.constant dense<0.000000e+00> : vector<8x64xf32>
    %225 = tpu.matmul %223, %224, %cst_170 {dimension_numbers = #tpu.dot_dimension_numbers<[1], [0], [0], [1], [0, 0, 1, 1], [], []>} : vector<8x32xf32>, vector<32x64xf32>, vector<8x64xf32> -> vector<8x64xf32>
    %c0_171 = arith.constant 0 : index
    %c0_172 = arith.constant 0 : index
    %226 = vector.load %arg8[%c0_171, %c0_172] : memref<1x64xf32, #tpu.memory_space<vmem>>, vector<1x64xf32>
    %227 = vector.broadcast %226 : vector<1x64xf32> to vector<8x64xf32>
    %228 = arith.addf %225, %227 : vector<8x64xf32>
    %cst_173 = arith.constant 0.000000e+00 : f32
    %229 = vector.broadcast %cst_173 : f32 to vector<8x64xf32>
    %230 = arith.maximumf %228, %229 : vector<8x64xf32>
    %c0_174 = arith.constant 0 : index
    %c0_175 = arith.constant 0 : index
    %231 = vector.load %arg9[%c0_174, %c0_175] : memref<64x32xf32, #tpu.memory_space<vmem>>, vector<64x32xf32>
    %cst_176 = arith.constant dense<0.000000e+00> : vector<8x32xf32>
    %232 = tpu.matmul %230, %231, %cst_176 {dimension_numbers = #tpu.dot_dimension_numbers<[1], [0], [0], [1], [0, 0, 1, 1], [], []>} : vector<8x64xf32>, vector<64x32xf32>, vector<8x32xf32> -> vector<8x32xf32>
    %233 = vector.broadcast %15 : vector<1x32xf32> to vector<8x32xf32>
    %234 = arith.addf %232, %233 : vector<8x32xf32>
    %235 = arith.addf %234, %203 : vector<8x32xf32>
    %236 = vector.shape_cast %235 : vector<8x32xf32> to vector<1x8x32xf32>
    %c0_177 = arith.constant 0 : index
    %c0_178 = arith.constant 0 : index
    %c0_179 = arith.constant 0 : index
    %237 = vector.load %arg10[%c0_177, %c0_178, %c0_179] : memref<1x8x32xf32, #tpu.memory_space<vmem>>, vector<1x8x32xf32>
    tpu.vector_store %arg10[%c0_177, %c0_178, %c0_179], %236 {strides = array<i32>} : memref<1x8x32xf32, #tpu.memory_space<vmem>>, vector<1x8x32xf32>,
    return
  }
  func.func @transform_0(%arg0: i32) -> (i32, i32, i32) {
    %c0_i32 = arith.constant 0 : i32
    %c0_i32_0 = arith.constant 0 : i32
    %c0_i32_1 = arith.constant 0 : i32
    return %arg0, %c0_i32, %c0_i32_0 : i32, i32, i32
  }
  func.func @transform_1(%arg0: i32) -> (i32, i32, i32) {
    %c0_i32 = arith.constant 0 : i32
    %c0_i32_0 = arith.constant 0 : i32
    %c0_i32_1 = arith.constant 0 : i32
    return %arg0, %c0_i32, %c0_i32_0 : i32, i32, i32
  }
  func.func @transform_2(%arg0: i32) -> (i32, i32, i32, i32) {
    %c0_i32 = arith.constant 0 : i32
    %c0_i32_0 = arith.constant 0 : i32
    %c0_i32_1 = arith.constant 0 : i32
    %c0_i32_2 = arith.constant 0 : i32
    %c0_i32_3 = arith.constant 0 : i32
    return %c0_i32, %c0_i32_0, %c0_i32_1, %c0_i32_2 : i32, i32, i32, i32
  }
  func.func @transform_3(%arg0: i32) -> (i32, i32, i32, i32) {
    %c0_i32 = arith.constant 0 : i32
    %c0_i32_0 = arith.constant 0 : i32
    %c0_i32_1 = arith.constant 0 : i32
    %c0_i32_2 = arith.constant 0 : i32
    %c0_i32_3 = arith.constant 0 : i32
    return %c0_i32, %c0_i32_0, %c0_i32_1, %c0_i32_2 : i32, i32, i32, i32
  }
  func.func @transform_4(%arg0: i32) -> (i32, i32, i32) {
    %c0_i32 = arith.constant 0 : i32
    %c0_i32_0 = arith.constant 0 : i32
    %c0_i32_1 = arith.constant 0 : i32
    %c0_i32_2 = arith.constant 0 : i32
    return %c0_i32, %c0_i32_0, %c0_i32_1 : i32, i32, i32
  }
  func.func @transform_5(%arg0: i32) -> (i32, i32, i32) {
    %c0_i32 = arith.constant 0 : i32
    %c0_i32_0 = arith.constant 0 : i32
    %c0_i32_1 = arith.constant 0 : i32
    %c0_i32_2 = arith.constant 0 : i32
    return %c0_i32, %c0_i32_0, %c0_i32_1 : i32, i32, i32
  }
  func.func @transform_6(%arg0: i32) -> (i32, i32) {
    %c0_i32 = arith.constant 0 : i32
    %c0_i32_0 = arith.constant 0 : i32
    %c0_i32_1 = arith.constant 0 : i32
    return %c0_i32, %c0_i32_0 : i32, i32
  }
  func.func @transform_7(%arg0: i32) -> (i32, i32) {
    %c0_i32 = arith.constant 0 : i32
    %c0_i32_0 = arith.constant 0 : i32
    %c0_i32_1 = arith.constant 0 : i32
    return %c0_i32, %c0_i32_0 : i32, i32
  }
  func.func @transform_8(%arg0: i32) -> (i32, i32) {
    %c0_i32 = arith.constant 0 : i32
    %c0_i32_0 = arith.constant 0 : i32
    %c0_i32_1 = arith.constant 0 : i32
    return %c0_i32, %c0_i32_0 : i32, i32
  }
  func.func @transform_9(%arg0: i32) -> (i32, i32, i32) {
    %c0_i32 = arith.constant 0 : i32
    %c0_i32_0 = arith.constant 0 : i32
    %c0_i32_1 = arith.constant 0 : i32
    return %arg0, %c0_i32, %c0_i32_0 : i32, i32, i32
  }
}

</mosaic_0001>

<bundles_post_ra>
// kernel: tpu_custom_call.1
= control target key start
LH: loop header
LB: loop body
LE: loop exit
PB: predicated region body
PF: predicated region fallthrough
CT: control target
= control target key end

     0   :  { %14 = vsyncpa [#allocation3], 0  ;;  %s3854_s0 = inlined_call_operand.vmem [shape: f32[2,8,32], index: 0, kind: input, shape index: {}]   ;;  %s3855_s1 = inlined_call_operand.vmem [shape: f32[2,8,32], index: 1, kind: input, shape index: {}]   ;;  %s3856_s2 = inlined_call_operand.vmem [shape: f32[3,4,32,8], index: 2, kind: input, shape index: {}]   ;;  %s3857_s3 = inlined_call_operand.vmem [shape: f32[3,4,1,8], index: 3, kind: input, shape index: {}]   ;;  %s3858_s4 = inlined_call_operand.vmem [shape: f32[4,8,32], index: 4, kind: input, shape index: {}]   ;;  %s3859_s5 = inlined_call_operand.vmem [shape: f32[6,1,32], index: 5, kind: input, shape index: {}]   ;;  %s3860_s6 = inlined_call_operand.vmem [shape: f32[32,64], index: 6, kind: input, shape index: {}]   ;;  %s3861_s7 = inlined_call_operand.vmem [shape: f32[1,64], index: 7, kind: input, shape index: {}]   ;;  %s3862_s8 = inlined_call_operand.vmem [shape: f32[64,32], index: 8, kind: input, shape index: {}]   ;;  %s3863_s9 = inlined_call_operand.hbm [shape: f32[2,8,32], index: 9, kind: output, shape index: {}]  }
   0x1   :  { %16 = vsyncpa [#allocation3 + $0x1], 0  ;;  %s3337_s30 = smov 0   ;;  %s3339_s10 = smov 0  }
   0x2   :  { %s3341_s11 = smov 0   ;;  %s3343_s12 = smov 0  }
   0x3 LB: > { %s3358_s13 = sadd.s32 4294967295, %s3281_s12   ;;  %s2624_s14 = sadd.s32 4294967294, %s3281_s12   ;;  %s3281_s12 = sphi %s3343_s12, %s3869_s12   ;;  %s3277_s11 = sphi %s3341_s11, %s3868_s11   ;;  %s3273_s10 = sphi %s3339_s10, %s3867_s10   ;;  %s3269_s30 = sphi %s3337_s30, %s3866_s30  }
   0x4   : > { %s3362_s15 = sadd.s32 1, %s3281_s12   ;;  %s228_s16 = sadd.s32 1, %s3277_s11 }
   0x5   : > { %s225_s17 = ssub.s32 %s3281_s12, %s3362_s15  ;;  %p238_p0 = scmp.ne.s32.totalorder %s3277_s11, %s3273_s10 }
   0x6   : > { %p226_p1 = scmp.eq.s32.totalorder %s225_s17, 0  ;;  %p239_p2 = scmp.eq.s32.totalorder %s3358_s13, 1 }
   0x7   : > { %p244_p3 = scmp.ne.s32.totalorder %s3273_s10, %s3269_s30  ;;  %p245_p4 = scmp.eq.s32.totalorder %s2624_s14, 1 }
   0x8   : > { %s3373_s18 = scalar_select %p226_p1, %s3277_s11, %s228_s16  }
   0x9   : > { %p3375_p5 = por %p239_p2, %p238_p0  ;;  %p3379_p6 = por %p245_p4, %p244_p3 }
   0xa   : > { %p2627_p7 = scmp.ge.s32.totalorder %s3281_s12, 1  ;;  %p298_p8 = scmp.lt.s32.totalorder %s3281_s12, 3 }
   0xc   : > { %p299_p9 = pnand %p2627_p7, %p298_p8 }
   0xd   : > { %v2640_v0 = vld [vmem:[%s3856_s2 + $0x80] sm:$0xff] (!%p299_p9)  ;;  %v2641_v1 = vld [vmem:[%s3856_s2 + $0x88] sm:$0xff] (!%p299_p9)  ;;  %v3283_v3 = vmov (!%p299_p9), 0.0|0.0   ;;  %v2642_v6 = vld [vmem:[%s3856_s2 + $0x90] sm:$0xff] (!%p299_p9)  ;;  %p337_p10 = scmp.lt.s32.totalorder (!%p299_p9), %s3358_s13, 1  ;;  %vm3284_vm0 = vmmov (!%p299_p9), 0  }
   0xe   : > { %302 = sbr.rel (%p299_p9) target bundleno = 4632 (0x1218), region = 56  ;;  %v387_v2 = vld [vmem:[%s3856_s2] sm:$0xff] (!%p299_p9)  ;;  %3073 = vmatprep.subr.bf16.mxu1 (!%p299_p9), %v3283_v3  ;;  %v3074_v4 = vpack.c.bf16 (!%p299_p9), %v2641_v1, %v2640_v0  ;;  %3067 = vmatprep.subr.bf16.mxu0 (!%p299_p9), %v3283_v3  ;;  %v388_v5 = vld [vmem:[%s3856_s2 + $0x8] sm:$0xff] (!%p299_p9)  ;;  %v2643_v7 = vld [vmem:[%s3856_s2 + $0x98] sm:$0xff] (!%p299_p9)  ;;  %v3285_v11 = vmov (!%p299_p9), 0.0   ;;  %vm358_vm1 = vcmask (!%p299_p9), 261120  }
   0xf   : > { %v3068_v8 = vpack.c.bf16 (!%p299_p9), %v388_v5, %v387_v2  ;;  %v389_v9 = vld [vmem:[%s3856_s2 + $0x10] sm:$0xff] (!%p299_p9)  ;;  %v390_v10 = vld [vmem:[%s3856_s2 + $0x18] sm:$0xff] (!%p299_p9)  ;;  %2864 = vmatprep.mubr.msk.f32.mxu1 (!%p299_p9), %vm3284_vm0, %v3285_v11  ;;  %2853 = vmatprep.mubr.msk.f32.mxu0 (!%p299_p9), %vm3284_vm0, %v3285_v11  ;;  %v3077_v12 = vpack.c.bf16 (!%p299_p9), %v2643_v7, %v2642_v6  ;;  %v2647_v14 = vld [vmem:[%s3856_s2 + $0x100] sm:$0xff] (!%p299_p9)  ;;  %vm640_vm2 = vcmask (!%p299_p9), 64512   ;;  %vm2463_vm3 = vcmask (!%p299_p9), 523264  }
  0x10   : > { %3075 = vmatpush3.bf16.msra.mxu1 (!%p299_p9), %v3074_v4  ;;  %v3071_v13 = vpack.c.bf16 (!%p299_p9), %v390_v10, %v389_v9  ;;  %v2648_v15 = vld [vmem:[%s3856_s2 + $0x108] sm:$0xff] (!%p299_p9)  ;;  %v2649_v19 = vld [vmem:[%s3856_s2 + $0x110] sm:$0xff] (!%p299_p9)  ;;  %v2650_v20 = vld [vmem:[%s3856_s2 + $0x118] sm:$0xff] (!%p299_p9) }
  0x11   : > { %3069 = vmatpush3.bf16.msra.mxu0 (!%p299_p9), %v3068_v8  ;;  %3076 = vmatprep.subr.bf16.mxu1 (!%p299_p9), %v3283_v3  ;;  %v3080_v18 = vpack.c.bf16 (!%p299_p9), %v2648_v15, %v2647_v14  ;;  %v3083_v21 = vpack.c.bf16 (!%p299_p9), %v2650_v20, %v2649_v19  ;;  %v2645_v22 = vld [vmem:[%s3857_s3 + $0x4] ss:$0 sm:$0xff] (!%p299_p9)  ;;  %v2638_v23 = vld [vmem:[%s3857_s3] ss:$0 sm:$0xff] (!%p299_p9)  ;;  %v2652_v30 = vld [vmem:[%s3857_s3 + $0x8] ss:$0 sm:$0xff] (!%p299_p9) }
  0x12   : > { %3070 = vmatprep.subr.bf16.mxu0 (!%p299_p9), %v3283_v3  ;;  %v2657_v42 = vld [vmem:[%s3856_s2 + $0x20] sm:$0xff] (!%p299_p9)  ;;  %v2658_v43 = vld [vmem:[%s3856_s2 + $0x28] sm:$0xff] (!%p299_p9)  ;;  %v2659_v45 = vld [vmem:[%s3856_s2 + $0x30] sm:$0xff] (!%p299_p9) }
  0x13   : > { %v3086_v44 = vpack.c.bf16 (!%p299_p9), %v2658_v43, %v2657_v42  ;;  %v2660_v46 = vld [vmem:[%s3856_s2 + $0x38] sm:$0xff] (!%p299_p9)  ;;  %v2664_v49 = vld [vmem:[%s3856_s2 + $0xa0] sm:$0xff] (!%p299_p9)  ;;  %v2665_v50 = vld [vmem:[%s3856_s2 + $0xa8] sm:$0xff] (!%p299_p9) }
  0x14   : > { %3078 = vmatpush3.bf16.msra.mxu1 (!%p299_p9), %v3077_v12  ;;  %v3089_v47 = vpack.c.bf16 (!%p299_p9), %v2660_v46, %v2659_v45  ;;  %v3092_v52 = vpack.c.bf16 (!%p299_p9), %v2665_v50, %v2664_v49  ;;  %v2666_v54 = vld [vmem:[%s3856_s2 + $0xb0] sm:$0xff] (!%p299_p9)  ;;  %v2667_v55 = vld [vmem:[%s3856_s2 + $0xb8] sm:$0xff] (!%p299_p9)  ;;  %v2669_v61 = vld [vmem:[%s3857_s3 + $0x5] ss:$0 sm:$0xff] (!%p299_p9) }
  0x15   : > { %s338_s25 = scalar_select %p337_p10, %s3358_s13, 1  ;;  %3072 = vmatpush3.bf16.msra.mxu0 %v3071_v13  ;;  %2883 = vmatprep.subr.mxu1 %v3285_v11  ;;  %v3095_v56 = vpack.c.bf16 %v2667_v55, %v2666_v54  ;;  %v2662_v62 = vld [vmem:[%s3857_s3 + $0x1] ss:$0 sm:$0xff]  ;;  %v2672_v5 = vld [vmem:[%s3856_s2 + $0x128] sm:$0xff]  ;;  %v2673_v6 = vld [vmem:[%s3856_s2 + $0x130] sm:$0xff] }
  0x16   : > { %3079 = vmatprep.subr.bf16.mxu0 %v3283_v3  ;;  %v2671_v4 = vld [vmem:[%s3856_s2 + $0x120] sm:$0xff]  ;;  %v2674_v8 = vld [vmem:[%s3856_s2 + $0x138] sm:$0xff] }
  0x17   : > { %s2629_s26 = sshll.u32 %s338_s25, 3  ;;  %v3098_v7 = vpack.c.bf16 %v2672_v5, %v2671_v4  ;;  %v3101_v9 = vpack.c.bf16 %v2674_v8, %v2673_v6  ;;  %v2696_v46 = vld [vmem:[%s3857_s3 + $0x6] ss:$0 sm:$0xff]  ;;  %s334_s25 = sand.u32 1, %s3273_s10  }
  0x18   : > { %s340_s21 = scalar_lea.vmem %s3854_s0, %s2629_s26  ;;  %s344_s24 = scalar_lea.vmem %s3855_s1, %s2629_s26 }
  0x19   : > { %v3431_v16 = vld [vmem:[%s340_s21] sm:$0xff]  ;;  %s2628_s27 = sshll.u32 %s334_s25, 3  ;;  %s2744_s26 = sshll.u32 %s3358_s13, 7 }
  0x1a   : > { %v3433_v17 = vld [vmem:[%s344_s24] sm:$0xff]  ;;  %2865 = vmatmul.mubr.msk.f32.vlgmr.msra.gmra.mrb[0].mxu1 %vm358_vm1, %v3431_v16  ;;  %s336_s14 = scalar_lea.vmem [#allocation2], %s2628_s27  ;;  %s3811_s22 = scalar_lea.hbm %s3863_s9, %s2744_s26 }
  0x1b   : > { %2854 = vmatmul.mubr.msk.f32.vlgmr.msra.gmra.mrb[0].mxu0 %vm358_vm1, %v3433_v17  ;;  %2885 = vmatprep.mubr.msk.f32.mxu1 %vm3284_vm0, %v3285_v11  ;;  %s2553_s16 = sshll.u32 %s336_s14, 4  ;;  %s2540_s23 = scalar_lea.sflag [#allocation3], %s334_s25  ;;  %s3813_s16 = int_to_ptr.vmem [resolvable:$true] %s2553_s16 }
  0x1c   : > { %3081 = vmatpush3.bf16.msra.mxu0 %v3080_v18  ;;  %2875 = vmatprep.mubr.msk.f32.mxu0 %vm3284_vm0, %v3285_v11  ;;  %s3219_s13 = scalar_lea.vmem %s3813_s16, 128  ;;  %s3286_s24 = smov [#allocation2]  }
  0x1d   : > { %3082 = vmatprep.subr.bf16.mxu0 %v3283_v3  ;;  %p3220_p11 = scmp.ne.s32.totalorder %s3813_s16, %s3219_s13  ;;  %s3223_s27 = sshll.u32 %s3286_s24, 4  ;;  %s3224_s27 = int_to_ptr.vmem [resolvable:$false] %s3223_s27 }
  0x1e   : > { %s3225_s28 = scalar_lea.vmem %s3224_s27, 256  ;;  %p3226_p0 = scmp.lt.s32.totalorder %s3813_s16, %s3224_s27 }
  0x1f   : > { %p3221_p12 = pnand %p3220_p11, %p3375_p5  ;;  %p3227_p1 = scmp.lt.s32.totalorder %s3225_s28, %s3219_s13 }
  0x20   : > { %3084 = vmatpush3.bf16.msra.mxu0 %v3083_v21 }
  0x21   : > { %2878 = vmatprep.subr.mxu0 %v3285_v11  ;;  %p3222_p13 = pneg %p3221_p12  ;;  %p3228_p2 = por %p3227_p1, %p3226_p0 }
  0x23   : > { %2876 = vmatmul.mubr.msk.f32.vlgmr.msra.gmra.mrb[2].mxu0 %vm358_vm1, %v3431_v16  ;;  %p3229_p3 = pnand %p3228_p2, %p3222_p13 }
  0x24   : > { %2880 = vmatprep.mubr.msk.f32.mxu0 %vm3284_vm0, %v3285_v11 }
  0xed   : > { %v553_v24 = vpop.f32.mrb[0].mxu1 }
  0xee   : > { %v554_v25 = vadd.f32 %v2645_v22, %v553_v24  ;;  %v2866_v26 = vpop.f32.mrb[1].mxu1  ;;  %v467_v27 = vpop.f32.mrb[0].mxu0  ;;  %v2676_v22 = vld [vmem:[%s3857_s3 + $0x9] ss:$0 sm:$0xff] }
  0xef   : > { %v468_v28 = vadd.f32 %v2638_v23, %v467_v27  ;;  %v2855_v29 = vpop.f32.mrb[1].mxu0 }
  0xf0   : > { %2879 = vmatpush3.xpose.msk.msra.mxu0 %vm640_vm2, %v554_v25  ;;  %v2681_v25 = vld [vmem:[%s3858_s4 + $0x8] sm:$0xff]  ;;  %v801_v29 = vld [vmem:[%s3858_s4] sm:$0xff] }
  0xf1   : > { %3085 = vmatprep.subr.bf16.mxu0 %v3283_v3 }
  0xf3   : > { %2881 = vmatmul.mubr.msk.f32.vlgmr.msra.gmra.mrb[4].mxu0 %vm640_vm2, %v468_v28 }
  0xf4   : > { %2896 = vmatprep.mubr.msk.f32.mxu0 %vm3284_vm0, %v3285_v11  ;;  %3087 = vmatpush3.bf16.msra.mxu0 %v3086_v44 }
  0xf5   : > { %3088 = vmatprep.subr.bf16.mxu0 %v3283_v3 }
  0xf6   : > { %v636_v31 = vpop.f32.mrb[2].mxu0 }
  0xf7   : > { %v637_v32 = vadd.f32 %v2652_v30, %v636_v31  ;;  %v2877_v33 = vpop.f32.mrb[3].mxu0  ;;  %v2691_v30 = vld [vmem:[%s3856_s2 + $0xc0] sm:$0xff]  ;;  %v2692_v31 = vld [vmem:[%s3856_s2 + $0xc8] sm:$0xff] }
  0xf8   : > { %3090 = vmatpush3.bf16.msra.mxu0 %v3089_v47  ;;  %v2693_v33 = vld [vmem:[%s3856_s2 + $0xd0] sm:$0xff] }
  0xf9   : > { %2884 = vmatpush3.msra.mxu1 %v637_v32  ;;  %3097 = vmatprep.subr.bf16.mxu0 %v3283_v3  ;;  %v3110_v32 = vpack.c.bf16 %v2692_v31, %v2691_v30 }
  0xfa   : > { %3091 = vmatprep.subr.bf16.mxu1 %v3283_v3 }
  0xfb   : > { %2897 = vmatmul.mubr.msk.f32.vlgmr.msra.gmra.mrb[6].mxu0 %vm358_vm1, %v3433_v17 }
  0xfc   : > { %2918 = vmatprep.mubr.msk.f32.mxu0 %vm3284_vm0, %v3285_v11  ;;  %3099 = vmatpush3.bf16.msra.mxu0 %v3098_v7 }
  0xfd   : > { %3100 = vmatprep.subr.bf16.mxu0 %v3283_v3 }
 0x100   : > { %3102 = vmatpush3.bf16.msra.mxu0 %v3101_v9  ;;  %v2703_v9 = vld [vmem:[%s3857_s3 + $0xa] ss:$0 sm:$0xff] }
 0x101   : > { %2931 = vmatprep.subr.mxu0 %v3285_v11 }
 0x103   : > { %2919 = vmatmul.mubr.msk.f32.vlgmr.msra.gmra.mrb[8].mxu0 %vm358_vm1, %v3431_v16 }
 0x104   : > { %2933 = vmatprep.mubr.msk.f32.mxu0 %vm3284_vm0, %v3285_v11  ;;  %2932 = vmatpush3.msra.mxu0 %v2681_v25  ;;  %v2717_v25 = vld [vmem:[%s3856_s2 + $0xe0] sm:$0xff] }
 0x105   : > { %3103 = vmatprep.subr.bf16.mxu0 %v3283_v3 }
 0x1c6   : > { %v713_v34 = vpop.f32.mrb[4].mxu0 }
 0x1c7   : > { %v2882_v35 = vpop.f32.mrb[5].mxu0  ;;  %v717_v36 = vsel %vm640_vm2, %v713_v34, -inf }
 0x1c8   : > { %718 = vmax.xlane.f32.xlu0 %v717_v36  ;;  %v2684_v36 = vld [vmem:[%s3856_s2 + $0x40] sm:$0xff] }
 0x1ce   : > { %v881_v57 = vpop.f32.mrb[6].mxu0 }
 0x1cf   : > { %v2898_v58 = vpop.f32.mrb[7].mxu0  ;;  %v882_v2 = vadd.f32 %v2662_v62, %v881_v57  ;;  %v2698_v57 = vld [vmem:[%s3856_s2 + $0x140] sm:$0xff] }
 0x1d0   : > { %v2699_v58 = vld [vmem:[%s3856_s2 + $0x148] sm:$0xff] }
 0x1d6   : > { %v1047_v21 = vpop.f32.mrb[8].mxu0 }
 0x1d7   : > { %v2920_v23 = vpop.f32.mrb[9].mxu0  ;;  %v1048_v24 = vadd.f32 %v2676_v22, %v1047_v21  ;;  %v2712_v22 = vld [vmem:[%s3856_s2 + $0x70] sm:$0xff] }
 0x1d8   : > { %v2713_v23 = vld [vmem:[%s3856_s2 + $0x78] sm:$0xff] }
 0x255   : > { %v719_v37 = vpop.xlane.xlu0 %718 }
 0x256   : > { %v720_v38 = vsub.f32 %v713_v34, %v719_v37  ;;  %v2694_v34 = vld [vmem:[%s3856_s2 + $0xd8] sm:$0xff]  ;;  %v2685_v37 = vld [vmem:[%s3856_s2 + $0x48] sm:$0xff] }
 0x257   : > { %v3113_v35 = vpack.c.bf16 %v2694_v34, %v2693_v33 }
 0x258   : > { %v721_v39 = vmul.f32 1.442695, %v720_v38  ;;  %v3104_v38 = vpack.c.bf16 %v2685_v37, %v2684_v36 }
 0x25a   : > { %3199 = vpow2.f32 %v721_v39  ;;  %v2686_v39 = vld [vmem:[%s3856_s2 + $0x50] sm:$0xff] }
 0x264   : > { %v3200_v40 = vpop.eup %3199 }
 0x265   : > { %v723_v41 = vsel %vm640_vm2, %v3200_v40, 0.0 }
 0x266   : > { %724 = vadd.xlane.f32.xlu0 %v723_v41 }
 0x2f3   : > { %v725_v48 = vpop.xlane.xlu0 %724 }
 0x2f4   : > { %3201 = vrcp.f32 %v725_v48 }
 0x2fe   : > { %v3202_v51 = vpop.eup %3201 }
 0x2ff   : > { %v727_v53 = vmul.f32 %v3202_v51, %v3200_v40  ;;  %v2687_v40 = vld [vmem:[%s3856_s2 + $0x58] sm:$0xff] }
 0x300   : > { %v3107_v43 = vpack.c.bf16 %v2687_v40, %v2686_v39  ;;  %v2715_v39 = vld [vmem:[%s3857_s3 + $0x3] ss:$0 sm:$0xff] }
 0x301   : > { %2886 = vmatmul.mubr.msk.f32.vlgmr.msra.gmra.mrb[2].mxu1 %vm640_vm2, %v727_v53  ;;  %v2689_v53 = vld [vmem:[%s3857_s3 + $0x2] ss:$0 sm:$0xff] }
 0x302   : > { %3093 = vmatpush3.bf16.msra.mxu1 %v3092_v52  ;;  %2907 = vmatprep.mubr.msk.f32.mxu1 %vm3284_vm0, %v3285_v11 }
 0x303   : > { %3094 = vmatprep.subr.bf16.mxu1 %v3283_v3 }
 0x306   : > { %3096 = vmatpush3.bf16.msra.mxu1 %v3095_v56 }
 0x307   : > { %2921 = vmatprep.subr.mxu1 %v3285_v11 }
 0x309   : > { %2908 = vmatmul.mubr.msk.f32.vlgmr.msra.gmra.mrb[4].mxu1 %vm358_vm1, %v3431_v16 }
 0x30a   : > { %2923 = vmatprep.mubr.msk.f32.mxu1 %vm3284_vm0, %v3285_v11 }
 0x3d4   : > { %v797_v59 = vpop.f32.mrb[2].mxu1 }
 0x3d5   : > { %v2887_v60 = vpop.f32.mrb[3].mxu1 }
 0x3d6   : > { %v3116_v60 = vpack.c.bf16 %v2699_v58, %v2698_v57 }
 0x3dc   : > { %v964_v63 = vpop.f32.mrb[4].mxu1 }
 0x3dd   : > { %v965_v0 = vadd.f32 %v2669_v61, %v964_v63  ;;  %v2909_v1 = vpop.f32.mrb[5].mxu1  ;;  %v2701_v61 = vld [vmem:[%s3856_s2 + $0x158] sm:$0xff] }
 0x3df   : > { %2922 = vmatpush3.xpose.msk.msra.mxu1 %vm640_vm2, %v965_v0 }
 0x3e0   : > { %2926 = vmatprep.subr.mxu1 %v3285_v11 }
 0x3e2   : > { %2924 = vmatmul.mubr.msk.f32.vlgmr.msra.gmra.mrb[6].mxu1 %vm640_vm2, %v882_v2 }
 0x3e3   : > { %2928 = vmatprep.mubr.msk.f32.mxu1 %vm3284_vm0, %v3285_v11  ;;  %2927 = vmatpush3.msra.mxu1 %v1048_v24  ;;  %v3125_v24 = vpack.c.bf16 %v2713_v23, %v2712_v22 }
 0x3e4   : > { %2936 = vmatprep.subr.mxu1 %v3285_v11 }
 0x4b5   : > { %v1123_v10 = vpop.f32.mrb[6].mxu1 }
 0x4b6   : > { %v2925_v12 = vpop.f32.mrb[7].mxu1  ;;  %v1127_v13 = vsel %vm640_vm2, %v1123_v10, -inf }
 0x4b7   : > { %1128 = vmax.xlane.f32.xlu1 %v1127_v13  ;;  %v2708_v13 = vld [vmem:[%s3858_s4 + $0x10] sm:$0xff] }
 0x544   : > { %v1129_v14 = vpop.xlane.xlu1 %1128 }
 0x545   : > { %v1130_v15 = vsub.f32 %v1123_v10, %v1129_v14 }
 0x547   : > { %v1131_v18 = vmul.f32 1.442695, %v1130_v15 }
 0x549   : > { %3203 = vpow2.f32 %v1131_v18 }
 0x553   : > { %v3204_v19 = vpop.eup %3203 }
 0x554   : > { %v1133_v20 = vsel %vm640_vm2, %v3204_v19, 0.0 }
 0x555   : > { %1134 = vadd.xlane.f32.xlu1 %v1133_v20  ;;  %v2711_v20 = vld [vmem:[%s3856_s2 + $0x68] sm:$0xff] }
 0x5e2   : > { %v1135_v26 = vpop.xlane.xlu1 %1134 }
 0x5e3   : > { %3205 = vrcp.f32 %v1135_v26  ;;  %v2718_v26 = vld [vmem:[%s3856_s2 + $0xe8] sm:$0xff] }
 0x5ed   : > { %v3206_v27 = vpop.eup %3205 }
 0x5ee   : > { %v1137_v28 = vmul.f32 %v3206_v27, %v3204_v19  ;;  %v2710_v19 = vld [vmem:[%s3856_s2 + $0x60] sm:$0xff]  ;;  %v3128_v27 = vpack.c.bf16 %v2718_v26, %v2717_v25 }
 0x5ef   : > { %v3122_v21 = vpack.c.bf16 %v2711_v20, %v2710_v19  ;;  %v2637_v19 = vld [vmem:[%s3859_s5 + $0x1] ss:$0 sm:$0xff]  ;;  %v2736_v20 = vld [vmem:[%s3859_s5 + $0x4] ss:$0 sm:$0xff] }
 0x5f0   : > { %2929 = vmatmul.mubr.msk.f32.vlgmr.msra.gmra.mrb[8].mxu1 %vm640_vm2, %v1137_v28  ;;  %v2719_v28 = vld [vmem:[%s3856_s2 + $0xf0] sm:$0xff] }
 0x5f1   : > { %2937 = vmatpush3.msra.mxu1 %v801_v29  ;;  %2938 = vmatprep.mubr.msk.f32.mxu1 %vm3284_vm0, %v3285_v11  ;;  %v2720_v29 = vld [vmem:[%s3856_s2 + $0xf8] sm:$0xff] }
 0x5f2   : > { %3109 = vmatprep.subr.bf16.mxu1 %v3283_v3 }
 0x5f4   : > { %2939 = vmatmul.mubr.msk.f32.vlgmr.msra.gmra.mrb[10].mxu1 %vm640_vm2, %v797_v59  ;;  %v2700_v59 = vld [vmem:[%s3856_s2 + $0x150] sm:$0xff] }
 0x5f5   : > { %3111 = vmatpush3.bf16.msra.mxu1 %v3110_v32  ;;  %2960 = vmatprep.mubr.msk.f32.mxu1 %vm3284_vm0, %v3285_v11  ;;  %v3119_v62 = vpack.c.bf16 %v2701_v61, %v2700_v59  ;;  %v3131_v32 = vpack.c.bf16 %v2720_v29, %v2719_v28  ;;  %v2729_v59 = vld [vmem:[%s3857_s3 + $0xb] ss:$0 sm:$0xff] }
 0x5f6   : > { %3112 = vmatprep.subr.bf16.mxu1 %v3283_v3 }
 0x5f9   : > { %3114 = vmatpush3.bf16.msra.mxu1 %v3113_v35 }
 0x5fa   : > { %2974 = vmatprep.subr.mxu1 %v3285_v11 }
 0x5fc   : > { %2961 = vmatmul.mubr.msk.f32.vlgmr.msra.gmra.mrb[12].mxu1 %vm358_vm1, %v3431_v16 }
 0x5fd   : > { %2976 = vmatprep.mubr.msk.f32.mxu1 %vm3284_vm0, %v3285_v11 }
 0x6c3   : > { %v1207_v41 = vpop.f32.mrb[8].mxu1 }
 0x6c4   : > { %v2930_v42 = vpop.f32.mrb[9].mxu1  ;;  %2934 = vmatmul.mubr.msk.f32.vlgmr.msra.gmra.mrb[10].mxu0 %vm640_vm2, %v1207_v41 }
 0x6c5   : > { %3105 = vmatpush3.bf16.msra.mxu0 %v3104_v38  ;;  %2949 = vmatprep.mubr.msk.f32.mxu0 %vm3284_vm0, %v3285_v11  ;;  %v2722_v38 = vld [vmem:[%s3857_s3 + $0x7] ss:$0 sm:$0xff] }
 0x6c6   : > { %3106 = vmatprep.subr.bf16.mxu0 %v3283_v3 }
 0x6c7   : > { %v1355_v44 = vpop.f32.mrb[10].mxu1 }
 0x6c8   : > { %v2940_v45 = vpop.f32.mrb[11].mxu1 }
 0x6c9   : > { %3108 = vmatpush3.bf16.msra.mxu0 %v3107_v43  ;;  %v2725_v45 = vld [vmem:[%s3856_s2 + $0x168] sm:$0xff] }
 0x6ca   : > { %3115 = vmatprep.subr.bf16.mxu0 %v3283_v3 }
 0x6cc   : > { %2950 = vmatmul.mubr.msk.f32.vlgmr.msra.gmra.mrb[12].mxu0 %vm358_vm1, %v3433_v17 }
 0x6cd   : > { %2971 = vmatprep.mubr.msk.f32.mxu0 %vm3284_vm0, %v3285_v11  ;;  %3117 = vmatpush3.bf16.msra.mxu0 %v3116_v60 }
 0x6ce   : > { %3118 = vmatprep.subr.bf16.mxu0 %v3283_v3 }
 0x6cf   : > { %v1521_v47 = vpop.f32.mrb[12].mxu1 }
 0x6d0   : > { %v1522_v48 = vadd.f32 %v2696_v46, %v1521_v47  ;;  %v2962_v49 = vpop.f32.mrb[13].mxu1  ;;  %v2726_v46 = vld [vmem:[%s3856_s2 + $0x170] sm:$0xff] }
 0x6d1   : > { %3120 = vmatpush3.bf16.msra.mxu0 %v3119_v62 }
 0x6d2   : > { %2975 = vmatpush3.xpose.msk.msra.mxu1 %vm640_vm2, %v1522_v48  ;;  %2984 = vmatprep.subr.mxu0 %v3285_v11  ;;  %v2727_v48 = vld [vmem:[%s3856_s2 + $0x178] sm:$0xff] }
 0x6d3   : > { %2979 = vmatprep.subr.mxu1 %v3285_v11  ;;  %v3137_v49 = vpack.c.bf16 %v2727_v48, %v2726_v46 }
 0x6d4   : > { %2972 = vmatmul.mubr.msk.f32.vlgmr.msra.gmra.mrb[14].mxu0 %vm358_vm1, %v3431_v16 }
 0x6d5   : > { %2986 = vmatprep.mubr.msk.f32.mxu0 %vm3284_vm0, %v3285_v11  ;;  %2985 = vmatpush3.msra.mxu0 %v2708_v13 }
 0x6d6   : > { %3127 = vmatprep.subr.bf16.mxu0 %v3283_v3 }
 0x797   : > { %v1282_v50 = vpop.f32.mrb[10].mxu0 }
 0x798   : > { %v3606_v51 = vadd.f32 %v1355_v44, %v1282_v50  ;;  %v2935_v52 = vpop.f32.mrb[11].mxu0  ;;  %v2724_v44 = vld [vmem:[%s3856_s2 + $0x160] sm:$0xff] }
 0x799   : > { %v3134_v47 = vpack.c.bf16 %v2725_v45, %v2724_v44  ;;  %v2453_v44 = vld [vmem:[%s3862_s8 + $0x20] sm:$0xff]  ;;  %v2454_v45 = vld [vmem:[%s3862_s8 + $0x28] sm:$0xff] }
 0x79a   : > { %v3152_v46 = vpack.c.bf16 %v2454_v45, %v2453_v44 }
 0x79f   : > { %v1438_v54 = vpop.f32.mrb[12].mxu0 }
 0x7a0   : > { %v1439_v55 = vadd.f32 %v2689_v53, %v1438_v54  ;;  %v2951_v56 = vpop.f32.mrb[13].mxu0  ;;  %v359_v53 = vsel %vm358_vm1, %v3433_v17, 0.0 }
 0x7a2   : > { %2977 = vmatmul.mubr.msk.f32.vlgmr.msra.gmra.mrb[14].mxu1 %vm640_vm2, %v1439_v55 }
 0x7a3   : > { %2981 = vmatprep.mubr.msk.f32.mxu1 %vm3284_vm0, %v3285_v11 }
 0x7a7   : > { %v1604_v8 = vpop.f32.mrb[14].mxu0 }
 0x7a8   : > { %v2973_v10 = vpop.f32.mrb[15].mxu0  ;;  %v1605_v12 = vadd.f32 %v2703_v9, %v1604_v8 }
 0x7aa   : > { %2980 = vmatpush3.msra.mxu1 %v1605_v12 }
 0x7ab   : > { %3121 = vmatprep.subr.bf16.mxu1 %v3283_v3 }
 0x875   : > { %v1680_v63 = vpop.f32.mrb[14].mxu1 }
 0x876   : > { %v2978_v0 = vpop.f32.mrb[15].mxu1  ;;  %v1684_v1 = vsel %vm640_vm2, %v1680_v63, -inf }
 0x877   : > { %1685 = vmax.xlane.f32.xlu0 %v1684_v1 }
 0x904   : > { %v1686_v2 = vpop.xlane.xlu0 %1685 }
 0x905   : > { %v1687_v4 = vsub.f32 %v1680_v63, %v1686_v2  ;;  %v2734_v63 = vld [vmem:[%s3858_s4 + $0x18] sm:$0xff] }
 0x907   : > { %v1688_v5 = vmul.f32 1.442695, %v1687_v4 }
 0x909   : > { %3207 = vpow2.f32 %v1688_v5 }
 0x913   : > { %v3208_v6 = vpop.eup %3207 }
 0x914   : > { %v1690_v7 = vsel %vm640_vm2, %v3208_v6, 0.0 }
 0x915   : > { %1691 = vadd.xlane.f32.xlu1 %v1690_v7 }
 0x9a2   : > { %v1692_v14 = vpop.xlane.xlu1 %1691 }
 0x9a3   : > { %3209 = vrcp.f32 %v1692_v14 }
 0x9ad   : > { %v3210_v15 = vpop.eup %3209 }
 0x9ae   : > { %v1694_v18 = vmul.f32 %v3210_v15, %v3208_v6  ;;  %v2636_v15 = vld [vmem:[%s3859_s5] ss:$0 sm:$0xff] }
 0x9b0   : > { %2982 = vmatmul.mubr.msk.f32.vlgmr.msra.gmra.mrb[16].mxu1 %vm640_vm2, %v1694_v18 }
 0x9b1   : > { %2997 = vmatprep.mubr.msk.f32.mxu1 %vm3284_vm0, %v3285_v11  ;;  %3123 = vmatpush3.bf16.msra.mxu1 %v3122_v21 }
 0x9b2   : > { %3124 = vmatprep.subr.bf16.mxu1 %v3283_v3 }
 0x9b5   : > { %3126 = vmatpush3.bf16.msra.mxu1 %v3125_v24 }
 0x9b6   : > { %3133 = vmatprep.subr.bf16.mxu1 %v3283_v3 }
 0x9b8   : > { %2998 = vmatmul.mubr.msk.f32.vlgmr.msra.gmra.mrb[18].mxu1 %vm358_vm1, %v3433_v17 }
 0x9b9   : > { %3019 = vmatprep.mubr.msk.f32.mxu1 %vm3284_vm0, %v3285_v11  ;;  %3135 = vmatpush3.bf16.msra.mxu1 %v3134_v47 }
 0x9ba   : > { %3136 = vmatprep.subr.bf16.mxu1 %v3283_v3 }
 0x9bd   : > { %3138 = vmatpush3.bf16.msra.mxu1 %v3137_v49 }
 0x9be   : > { %3032 = vmatprep.subr.mxu1 %v3285_v11 }
 0x9c0   : > { %3020 = vmatmul.mubr.msk.f32.vlgmr.msra.gmra.mrb[20].mxu1 %vm358_vm1, %v3431_v16 }
 0x9c1   : > { %3034 = vmatprep.mubr.msk.f32.mxu1 %vm3284_vm0, %v3285_v11  ;;  %3033 = vmatpush3.msra.mxu1 %v2734_v63 }
 0x9c2   : > { %3145 = vmatprep.subr.bf16.mxu1 %v3283_v3 }
 0xa83   : > { %v1764_v30 = vpop.f32.mrb[16].mxu1 }
 0xa84   : > { %v2983_v31 = vpop.f32.mrb[17].mxu1  ;;  %2987 = vmatmul.mubr.msk.f32.vlgmr.msra.gmra.mrb[16].mxu0 %vm640_vm2, %v1764_v30 }
 0xa85   : > { %3129 = vmatpush3.bf16.msra.mxu0 %v3128_v27  ;;  %3008 = vmatprep.mubr.msk.f32.mxu0 %vm3284_vm0, %v3285_v11 }
 0xa86   : > { %3130 = vmatprep.subr.bf16.mxu0 %v3283_v3 }
 0xa89   : > { %3132 = vmatpush3.bf16.msra.mxu0 %v3131_v32  ;;  %v2364_v32 = vld [vmem:[%s3860_s6] sm:$0xff] }
 0xa8a   : > { %3022 = vmatprep.subr.mxu0 %v3285_v11 }
 0xa8b   : > { %v1923_v33 = vpop.f32.mrb[18].mxu1 }
 0xa8c   : > { %3009 = vmatmul.mubr.msk.f32.vlgmr.msra.gmra.mrb[18].mxu0 %vm358_vm1, %v3431_v16  ;;  %v2999_v34 = vpop.f32.mrb[19].mxu1  ;;  %v1924_v43 = vadd.f32 %v2715_v39, %v1923_v33  ;;  %v2365_v33 = vld [vmem:[%s3860_s6 + $0x8] sm:$0xff] }
 0xa8d   : > { %3024 = vmatprep.mubr.msk.f32.mxu0 %vm3284_vm0, %v3285_v11  ;;  %v3140_v34 = vpack.c.bf16 %v2365_v33, %v2364_v32  ;;  %v2450_v39 = vld [vmem:[%s3862_s8 + $0x8] sm:$0xff] }
 0xa93   : > { %v2089_v16 = vpop.f32.mrb[20].mxu1 }
 0xa94   : > { %v3021_v60 = vpop.f32.mrb[21].mxu1  ;;  %v2090_v61 = vadd.f32 %v2729_v59, %v2089_v16 }
 0xb57   : > { %v1839_v35 = vpop.f32.mrb[16].mxu0 }
 0xb58   : > { %v3685_v36 = vadd.f32 %v1839_v35, %v3606_v51  ;;  %v2988_v37 = vpop.f32.mrb[17].mxu0  ;;  %v2366_v35 = vld [vmem:[%s3860_s6 + $0x10] sm:$0xff] }
 0xb5f   : > { %v2006_v40 = vpop.f32.mrb[18].mxu0 }
 0xb60   : > { %v2007_v41 = vadd.f32 %v2722_v38, %v2006_v40  ;;  %v3010_v42 = vpop.f32.mrb[19].mxu0  ;;  %v2449_v38 = vld [vmem:[%s3862_s8] sm:$0xff]  ;;  %v2451_v40 = vld [vmem:[%s3862_s8 + $0x10] sm:$0xff] }
 0xb61   : > { %v2452_v42 = vld [vmem:[%s3862_s8 + $0x18] sm:$0xff] }
 0xb62   : > { %3023 = vmatpush3.xpose.msk.msra.mxu0 %vm640_vm2, %v2007_v41  ;;  %v3146_v41 = vpack.c.bf16 %v2450_v39, %v2449_v38 }
 0xb63   : > { %3027 = vmatprep.subr.mxu0 %v3285_v11 }
 0xb65   : > { %3025 = vmatmul.mubr.msk.f32.vlgmr.msra.gmra.mrb[20].mxu0 %vm640_vm2, %v1924_v43  ;;  %v3149_v43 = vpack.c.bf16 %v2452_v42, %v2451_v40 }
 0xb66   : > { %3029 = vmatprep.mubr.msk.f32.mxu0 %vm3284_vm0, %v3285_v11  ;;  %3028 = vmatpush3.msra.mxu0 %v2090_v61 }
 0xb67   : > { %3139 = vmatprep.subr.bf16.mxu0 %v3283_v3 }
 0xc38   : > { %v2165_v50 = vpop.f32.mrb[20].mxu0 }
 0xc39   : > { %v3026_v51 = vpop.f32.mrb[21].mxu0  ;;  %v2169_v52 = vsel %vm640_vm2, %v2165_v50, -inf }
 0xc3a   : > { %2170 = vmax.xlane.f32.xlu0 %v2169_v52  ;;  %v2737_v51 = vld [vmem:[%s3859_s5 + $0x2] ss:$0 sm:$0xff] }
 0xc3e   : > { %360 = vadd.xlane.f32.xlu0 %v359_v53  ;;  %v2738_v53 = vld [vmem:[%s3859_s5 + $0x3] ss:$0 sm:$0xff] }
 0xcc7   : > { %v2171_v54 = vpop.xlane.xlu0 %2170 }
 0xcc8   : > { %v2172_v55 = vsub.f32 %v2165_v50, %v2171_v54 }
 0xcca   : > { %v2173_v56 = vmul.f32 1.442695, %v2172_v55 }
 0xccb   : > { %v361_v62 = vpop.xlane.xlu0 %360 }
 0xccc   : > { %3211 = vpow2.f32 %v2173_v56  ;;  %v363_v0 = vmul.f32 0.03125, %v361_v62  ;;  %v2456_v56 = vld [vmem:[%s3862_s8 + $0x38] sm:$0xff]  ;;  %v2741_v62 = vld [vmem:[%s3859_s5 + $0x5] ss:$0 sm:$0xff] }
 0xcce   : > { %v364_v1 = vsub.f32 %v3433_v17, %v363_v0 }
 0xcd0   : > { %v365_v2 = vmul.f32 %v364_v1, %v364_v1 }
 0xcd2   : > { %v366_v4 = vsel %vm358_vm1, %v365_v2, 0.0 }
 0xcd6   : > { %v3212_v57 = vpop.eup %3211 }
 0xcd7   : > { %v2175_v58 = vsel %vm640_vm2, %v3212_v57, 0.0 }
 0xcd8   : > { %2176 = vadd.xlane.f32.xlu1 %v2175_v58  ;;  %v2739_v58 = vld [vmem:[%s3861_s7] ss:$0 sm:$0xff] }
 0xcdc   : > { %367 = vadd.xlane.f32.xlu1 %v366_v4 }
 0xd65   : > { %v2177_v5 = vpop.xlane.xlu1 %2176 }
 0xd66   : > { %3213 = vrcp.f32 %v2177_v5 }
 0xd69   : > { %v368_v17 = vpop.xlane.xlu1 %367 }
 0xd6a   : > { %v369_v10 = vmul.f32 0.03125, %v368_v17 }
 0xd6c   : > { %v370_v12 = vadd.f32 1e-06, %v369_v10 }
 0xd6e   : > { %3215 = vrsqrt.f32 %v370_v12 }
 0xd70   : > { %v3214_v6 = vpop.eup %3213 }
 0xd71   : > { %v2179_v7 = vmul.f32 %v3214_v6, %v3212_v57 }
 0xd73   : > { %3030 = vmatmul.mubr.msk.f32.vlgmr.msra.gmra.mrb[22].mxu0 %vm640_vm2, %v2179_v7 }
 0xd74   : > { %3045 = vmatprep.mubr.msk.f32.mxu0 %vm3284_vm0, %v3285_v11  ;;  %3141 = vmatpush3.bf16.msra.mxu0 %v3140_v34 }
 0xd75   : > { %3142 = vmatprep.subr.bf16.mxu0 %v3283_v3 }
 0xd78   : > { %v3216_v13 = vpop.eup %3215 }
 0xd79   : > { %v372_v14 = vmul.f32 %v3216_v13, %v364_v1 }
 0xd7b   : > { %v379_v18 = vmul.f32 %v2636_v15, %v372_v14 }
 0xd7d   : > { %v386_v23 = vadd.f32 %v2637_v19, %v379_v18 }
 0xe46   : > { %v2249_v8 = vpop.f32.mrb[22].mxu0 }
 0xe47   : > { %v3031_v9 = vpop.f32.mrb[23].mxu0  ;;  %3035 = vmatmul.mubr.msk.f32.vlgmr.msra.gmra.mrb[22].mxu1 %vm640_vm2, %v2249_v8 }
 0xe48   : > { %3064 = vmatprep.mubr.msk.f32.mxu1 %vm3284_vm0, %v3285_v11  ;;  %3147 = vmatpush3.bf16.msra.mxu1 %v3146_v41 }
 0xe49   : > { %3148 = vmatprep.subr.bf16.mxu1 %v3283_v3 }
 0xe4c   : > { %3150 = vmatpush3.bf16.msra.mxu1 %v3149_v43 }
 0xe4d   : > { %3151 = vmatprep.subr.bf16.mxu1 %v3283_v3 }
 0xe50   : > { %3153 = vmatpush3.bf16.msra.mxu1 %v3152_v46 }
 0xe51   : > { %3154 = vmatprep.subr.bf16.mxu1 %v3283_v3  ;;  %v2455_v3 = vld [vmem:[%s3862_s8 + $0x30] sm:$0xff] }
 0xe52   : > { %v3155_v57 = vpack.c.bf16 %v2456_v56, %v2455_v3 }
 0xe54   : > { %3156 = vmatpush3.bf16.msra.mxu1 %v3155_v57 }
 0xf1a   : > { %v2324_v11 = vpop.f32.mrb[22].mxu1 }
 0xf1b   : > { %v2328_v21 = vadd.f32 %v2324_v11, %v3685_v36  ;;  %v3036_v22 = vpop.f32.mrb[23].mxu1  ;;  %v2367_v36 = vld [vmem:[%s3860_s6 + $0x18] sm:$0xff] }
 0xf1c   : > { %v3143_v37 = vpack.c.bf16 %v2367_v36, %v2366_v35 }
 0xf1d   : > { %v2335_v24 = vadd.f32 %v2736_v20, %v2328_v21 }
 0xf1e   : > { %3144 = vmatpush3.bf16.msra.mxu0 %v3143_v37 }
 0xf1f   : > { %v3746_v25 = vadd.f32 %v2335_v24, %v386_v23 }
 0xf21   : > { %v2337_v26 = vsel %vm358_vm1, %v3746_v25, 0.0 }
 0xf22   : > { %2338 = vadd.xlane.f32.xlu0 %v2337_v26 }
 0xfaf   : > { %v2339_v27 = vpop.xlane.xlu0 %2338 }
 0xfb0   : > { %v2340_v28 = vmul.f32 0.03125, %v2339_v27 }
 0xfb2   : > { %v2341_v29 = vsub.f32 %v3746_v25, %v2340_v28 }
 0xfb4   : > { %v2342_v30 = vmul.f32 %v2341_v29, %v2341_v29 }
 0xfb6   : > { %v2343_v31 = vsel %vm358_vm1, %v2342_v30, 0.0 }
 0xfb7   : > { %2344 = vadd.xlane.f32.xlu1 %v2343_v31 }
0x1044   : > { %v2345_v47 = vpop.xlane.xlu1 %2344 }
0x1045   : > { %v2346_v48 = vmul.f32 0.03125, %v2345_v47 }
0x1047   : > { %v2347_v49 = vadd.f32 1e-06, %v2346_v48 }
0x1049   : > { %3217 = vrsqrt.f32 %v2347_v49 }
0x1053   : > { %v3218_v50 = vpop.eup %3217 }
0x1054   : > { %v2349_v52 = vmul.f32 %v3218_v50, %v2341_v29 }
0x1056   : > { %v2356_v54 = vmul.f32 %v2737_v51, %v2349_v52 }
0x1058   : > { %v2363_v55 = vadd.f32 %v2738_v53, %v2356_v54 }
0x105a   : > { %3046 = vmatmul.mubr.msk.f32.vlgmr.msra.gmra.mrb[24].mxu0 %vm358_vm1, %v2363_v55 }
0x112d   : > { %v2444_v16 = vpop.f32.mrb[24].mxu0 }
0x112e   : > { %v2445_v59 = vadd.f32 %v2739_v58, %v2444_v16  ;;  %v3047_v60 = vpop.f32.mrb[25].mxu0 }
0x1130   : > { %v2448_v61 = vmax.f32 %v2445_v59, 0.0 }
0x1132   : > { %3065 = vmatmul.mubr.msk.f32.vlgmr.msra.gmra.mrb[24].mxu1 %vm2463_vm3, %v2448_v61 }
0x1205   : > { %v2533_v63 = vpop.f32.mrb[24].mxu1 }
0x1206   : > { %v2534_v0 = vadd.f32 %v2741_v62, %v2533_v63  ;;  %v3066_v1 = vpop.f32.mrb[25].mxu1 }
0x1208   : > { %v2537_v2 = vadd.f32 %v2534_v0, %v3746_v25 }
0x120a   : > { %2538 = vst.msk [vmem:[%s336_s14] sm:$0xff] %vm358_vm1, %v2537_v2 }
0x120b   : > { %3232 = shalt.err (!%p3229_p3)
}
0x120c   : > { %s3233_s25 = scalar_lea.hbm %s3811_s22, 128  ;;  %s3237_s14 = scalar_lea.hbm %s3863_s9, 256 }
0x120d   : > { %p3234_p4 = scmp.ne.s32.totalorder %s3811_s22, %s3233_s25  ;;  %p3238_p9 = scmp.lt.u32.totalorder %s3811_s22, %s3863_s9 }
0x120e   : > { %p3239_p10 = scmp.lt.u32.totalorder %s3237_s14, %s3233_s25  ;;  %p3241_p12 = scmp.lt.u32.totalorder %s3233_s25, %s3811_s22 }
0x120f   : > { %p3235_p7 = pnand %p3234_p4, %p3375_p5 }
0x1210   : > { %p3240_p11 = por %p3239_p10, %p3238_p9 }
0x1211   : > { %p3236_p8 = pneg %p3235_p7 }
0x1212   : > { %p3242_p13 = por %p3241_p12, %p3240_p11 }
0x1214   : > { %p3243_p0 = pnand %p3242_p13, %p3236_p8 }
0x1216   : > { %3246 = shalt.err (!%p3243_p0)
}
0x1217   : > { %3157 = dma.vmem_to_hbm [thread:$0]  (%p3375_p5), %s3813_s16, 128, %s3811_s22, %s2540_s23  }
0x1218 PF: > { %p3163_p1 = scmp.ge.s32.totalorder %s3281_s12, 2  ;;  %s2565_s13 = sand.u32 1, %s3269_s30  }
0x1219   : > { %s2566_s24 = scalar_lea.sflag [#allocation3], %s2565_s13 }
0x121a   : > { %p3160_p2 = pnand %p3163_p1, %p3379_p6 }
0x121c   : > { %3264 = dma.done.wait (!%p3160_p2), %s2566_s24, 128  }
0x121d   : > { %3266 = vsyncadd (!%p3160_p2), %s2566_s24, 4294967168  ;;  %p19_p3 = scmp.ge.s32.totalorder %s3362_s15, 4   ;;  %s3866_s30 = smov %s3273_s10 }
0x121e   : > { %s3867_s10 = smov %s3277_s11  ;;  %s3868_s11 = smov %s3373_s18 }
0x121f   : > { %s3869_s12 = smov %s3362_s15  ;;  %21 = sbr.rel (!%p19_p3) target bundleno = 3 (0x3), region = 124 }
0x1226   :  { %2571 = vsyncpa [#allocation3], 1 }
0x1227   :  { %2573 = vsyncpa [#allocation3 + $0x1], 1 }

</bundles_post_ra>
